<compile_context>
chip_gen: v5e
topology: v5e:2x2
jax: 0.10.0
libtpu: 0.0.40
codegen_flags: <defaults>
</compile_context>

<pallas_src>
import math
import functools

import jax
import jax.numpy as jnp
from jax.experimental import pallas as pl
from jax.experimental.pallas import tpu as pltpu


# ----------------------------- kernel helpers --------------------------------

def _layer_norm(x, gamma, beta, eps=1e-5):
    # x: (N, D), gamma/beta: (1, D). PyTorch LayerNorm: biased variance, eps in sqrt.
    mu = jnp.mean(x, axis=-1, keepdims=True)
    var = jnp.mean(jnp.square(x - mu), axis=-1, keepdims=True)
    return (x - mu) * jax.lax.rsqrt(var + eps) * gamma + beta


# --------------------------- fused encoder kernel -----------------------------

def fused_encoder_kernel(x_ref, pos_ref,
                         wqk_ref, bqk_ref, wv_ref, bv_ref, wo_ref, bo_ref,
                         g1_ref, be1_ref, w1_ref, b1_ref, w2_ref, b2_ref,
                         g2_ref, be2_ref, gf_ref, bf_ref,
                         o_ref,
                         x_vmem,
                         *, nhead, batch, seq, has_final_norm):
    l = pl.program_id(0)
    n_layers = pl.num_programs(0)

    # Load the input activation from HBM only once (layer 0); it is carried in
    # VMEM for the remaining layers.
    @pl.when(l == 0)
    def _():
        x_vmem[...] = x_ref[...].astype(jnp.float32)

    x = x_vmem[...]                    # (B*S, D) f32 activation carry
    pos = pos_ref[...]                 # (B*S, D)
    D = x.shape[-1]
    hd = D // nhead

    # q = k = with_pos_embed(src, pos); v = src   (DETR encoder layer).
    # Attention scale 1/sqrt(hd) is already folded into wqk/bqk (Q columns).
    qk_in_bf = (x + pos).astype(jnp.bfloat16)
    x_bf = x.astype(jnp.bfloat16)

    # Fused Q/K projection: one (B*S, D) @ (D, 2D) MXU op, bias add in f32.
    qk = jnp.dot(qk_in_bf, wqk_ref[0], preferred_element_type=jnp.float32) + bqk_ref[0]
    v = jnp.dot(x_bf, wv_ref[0], preferred_element_type=jnp.float32) + bv_ref[0]

    q_bf = qk[:, :D].astype(jnp.bfloat16)
    k_bf = qk[:, D:].astype(jnp.bfloat16)
    v_bf = v.astype(jnp.bfloat16)

    # Multi-head scaled dot-product attention, batch handled in-kernel with
    # static row slices.  Per-head PV results are kept as values (no scratch
    # slab => no masked column stores) and concatenated once per batch element.
    ctx_rows = []
    for b in range(batch):
        rs = slice(b * seq, (b + 1) * seq)
        heads = []
        for h in range(nhead):
            cs = slice(h * hd, (h + 1) * hd)
            s = jax.lax.dot_general(q_bf[rs, cs], k_bf[rs, cs],
                                    (((1,), (1,)), ((), ())),
                                    preferred_element_type=jnp.float32)   # (S, S)
            s = s - jnp.max(s, axis=-1, keepdims=True)
            p = jnp.exp(s)
            p = p * pl.reciprocal(jnp.sum(p, axis=-1, keepdims=True), approx=True)
            heads.append(jnp.dot(p.astype(jnp.bfloat16), v_bf[rs, cs],
                                 preferred_element_type=jnp.float32))     # (S, hd)
        ctx_rows.append(jnp.concatenate(heads, axis=-1))                  # (S, D)
    ctx = jnp.concatenate(ctx_rows, axis=0) if batch > 1 else ctx_rows[0]  # (B*S, D)

    attn_out = jnp.dot(ctx.astype(jnp.bfloat16), wo_ref[0],
                       preferred_element_type=jnp.float32) + bo_ref[0]

    # residual + norm1
    src1 = _layer_norm(x + attn_out, g1_ref[0], be1_ref[0])

    # FFN: linear1 -> relu -> linear2
    h1 = jnp.dot(src1.astype(jnp.bfloat16), w1_ref[0],
                 preferred_element_type=jnp.float32) + b1_ref[0]
    h1 = jnp.maximum(h1, 0.0)
    ff = jnp.dot(h1.astype(jnp.bfloat16), w2_ref[0],
                 preferred_element_type=jnp.float32) + b2_ref[0]

    # residual + norm2 -> activation carry for the next layer
    out = _layer_norm(src1 + ff, g2_ref[0], be2_ref[0])
    x_vmem[...] = out

    # Last layer: apply the (optional) final LayerNorm and write the output block.
    @pl.when(l == n_layers - 1)
    def _():
        y = _layer_norm(out, gf_ref[...], bf_ref[...]) if has_final_norm else out
        o_ref[...] = y.astype(o_ref.dtype)


# ------------------------- one-time weight packing -----------------------------

def pack_encoder_params(layer_params, final_norm, nhead):
    """Stack per-layer params, fuse Q/K, fold attention scale, cast MXU operands
    to bf16.  Call ONCE at model-load time, not per forward call."""
    D = layer_params[0]['wq'].shape[0]
    hd = D // nhead
    scale = 1.0 / math.sqrt(hd)

    def stack(name, dtype=None):
        a = jnp.stack([lp[name] for lp in layer_params], axis=0)
        return a.astype(dtype) if dtype is not None else a

    # Packed Q/K weights (L, D, 2D); attention scale folded into the Q columns.
    wqk = jnp.concatenate([stack('wq') * scale, stack('wk')], axis=-1).astype(jnp.bfloat16)
    bqk = jnp.concatenate([stack('bq') * scale, stack('bk')], axis=-1)   # (L, 1, 2D) f32

    has_fn = final_norm is not None
    packed = {
        'wqk': wqk, 'bqk': bqk,
        'wv': stack('wv', jnp.bfloat16), 'bv': stack('bv'),
        'wo': stack('wo', jnp.bfloat16), 'bo': stack('bo'),
        'g1': stack('g1'), 'be1': stack('be1'),
        'w1': stack('w1', jnp.bfloat16), 'b1': stack('b1'),
        'w2': stack('w2', jnp.bfloat16), 'b2': stack('b2'),
        'g2': stack('g2'), 'be2': stack('be2'),
        'gf': final_norm['g'] if has_fn else jnp.ones((1, D), jnp.float32),
        'bf': final_norm['b'] if has_fn else jnp.zeros((1, D), jnp.float32),
        'has_final_norm': has_fn,
        'nhead': nhead,
    }
    return packed


# ------------------------------- wrapper -------------------------------------

_WEIGHT_NAMES = ['wqk', 'bqk', 'wv', 'bv', 'wo', 'bo', 'g1', 'be1',
                 'w1', 'b1', 'w2', 'b2', 'g2', 'be2']


def transformer_encoder_forward(src, pos, packed):
    """src, pos: (S, B, D).  Returns (S, B, D)."""
    S, B, D = src.shape
    nhead = packed['nhead']
    has_fn = packed['has_final_norm']
    L = packed['wqk'].shape[0]
    assert D % nhead == 0

    # One transpose+flatten in / one out for the whole encoder.
    x = jnp.transpose(src, (1, 0, 2)).reshape(B * S, D)   # (B*S, D)
    p = jnp.transpose(pos, (1, 0, 2)).reshape(B * S, D)

    weights = [packed[n] for n in _WEIGHT_NAMES]
    w_specs = [pl.BlockSpec((1,) + w.shape[1:], lambda l: (l, 0, 0)) for w in weights]
    gf, bf = packed['gf'], packed['bf']
    fn_specs = [pl.BlockSpec(gf.shape, lambda l: (0, 0)),
                pl.BlockSpec(bf.shape, lambda l: (0, 0))]

    # VMEM budget: use most of the physical capacity (128 MiB on v5e/v6e,
    # 64 MiB/TC on v7x) with a conservative fallback.
    try:
        cap = pltpu.get_tpu_info().vmem_capacity_bytes
        vmem_limit = int(min(100 * 1024 * 1024, cap * 3 // 4))
    except Exception:
        vmem_limit = 64 * 1024 * 1024

    out = pl.pallas_call(
        functools.partial(fused_encoder_kernel, nhead=nhead, batch=B, seq=S,
                          has_final_norm=has_fn),
        out_shape=jax.ShapeDtypeStruct((B * S, D), src.dtype),
        grid=(L,),
        in_specs=[pl.BlockSpec((B * S, D), lambda l: (0, 0)),   # x  (fetched once)
                  pl.BlockSpec((B * S, D), lambda l: (0, 0))]   # pos (fetched once)
                 + w_specs + fn_specs,
        out_specs=pl.BlockSpec((B * S, D), lambda l: (0, 0)),   # written once at end
        scratch_shapes=[pltpu.VMEM((B * S, D), jnp.float32)],   # activation carry
        compiler_params=pltpu.CompilerParams(
            dimension_semantics=("arbitrary",),
            vmem_limit_bytes=vmem_limit),
    )(x, p, *weights, gf, bf)

    return jnp.transpose(out.reshape(B, S, D), (1, 0, 2))


# -------------------------- pure-JAX reference --------------------------------

def _ref_layer(x, pos, lp, nhead):
    # x, pos: (B, S, D)
    B, S, D = x.shape
    hd = D // nhead
    qk_in = x + pos
    q = qk_in @ lp['wq'] + lp['bq']
    k = qk_in @ lp['wk'] + lp['bk']
    v = x @ lp['wv'] + lp['bv']

    def split(t):  # (B, S, D) -> (B, nhead, S, hd)
        return jnp.transpose(t.reshape(B, S, nhead, hd), (0, 2, 1, 3))
    qh, kh, vh = split(q), split(k), split(v)
    scores = jnp.einsum('bhqd,bhkd->bhqk', qh * (1.0 / math.sqrt(hd)), kh)
    attn = jax.nn.softmax(scores, axis=-1)
    out = jnp.einsum('bhqk,bhkd->bhqd', attn, vh)
    out = jnp.transpose(out, (0, 2, 1, 3)).reshape(B, S, D)
    out = out @ lp['wo'] + lp['bo']

    def ln(t, g, b, eps=1e-5):
        mu = jnp.mean(t, axis=-1, keepdims=True)
        var = jnp.mean((t - mu) ** 2, axis=-1, keepdims=True)
        return (t - mu) * jax.lax.rsqrt(var + eps) * g + b

    src = ln(x + out, lp['g1'], lp['be1'])
    ff = jnp.maximum(src @ lp['w1'] + lp['b1'], 0.0) @ lp['w2'] + lp['b2']
    return ln(src + ff, lp['g2'], lp['be2'])


def _ref_forward(src, pos, layer_params, final_norm, nhead):
    x = jnp.transpose(src, (1, 0, 2))
    p = jnp.transpose(pos, (1, 0, 2))
    for lp in layer_params:
        x = _ref_layer(x, p, lp, nhead)
    if final_norm is not None:
        mu = jnp.mean(x, axis=-1, keepdims=True)
        var = jnp.mean((x - mu) ** 2, axis=-1, keepdims=True)
        x = (x - mu) * jax.lax.rsqrt(var + 1e-5) * final_norm['g'] + final_norm['b']
    return jnp.transpose(x, (1, 0, 2))


# --------------------------------- main ----------------------------------------

if __name__ == "__main__":
    # small shapes consistent with the module's forward:
    S, B, D = 8, 2, 32          # seq, batch, d_model
    NHEAD = 4
    DIM_FF = 64
    NUM_LAYERS = 2

    key = jax.random.PRNGKey(0)

    def nrm(k, shape, scale=0.05):
        return (scale * jax.random.normal(k, shape)).astype(jnp.float32)

    layer_params = []
    for _ in range(NUM_LAYERS):
        key, *ks = jax.random.split(key, 13)
        lp = {
            # weights stored pre-transposed so the kernel computes x @ W (+ b),
            # equivalent to PyTorch's x @ W_pt.T + b
            'wq': nrm(ks[0], (D, D)),        'bq': nrm(ks[1], (1, D)),
            'wk': nrm(ks[2], (D, D)),        'bk': nrm(ks[3], (1, D)),
            'wv': nrm(ks[4], (D, D)),        'bv': nrm(ks[5], (1, D)),
            'wo': nrm(ks[6], (D, D)),        'bo': nrm(ks[7], (1, D)),
            'w1': nrm(ks[8], (D, DIM_FF)),   'b1': nrm(ks[9], (1, DIM_FF)),
            'w2': nrm(ks[10], (DIM_FF, D)),  'b2': nrm(ks[11], (1, D)),
            'g1': jnp.ones((1, D), jnp.float32), 'be1': jnp.zeros((1, D), jnp.float32),
            'g2': jnp.ones((1, D), jnp.float32), 'be2': jnp.zeros((1, D), jnp.float32),
        }
        layer_params.append(lp)

    final_norm = {'g': jnp.ones((1, D), jnp.float32),
                  'b': jnp.zeros((1, D), jnp.float32)}

    # One-time weight packing ("model load"), not part of the per-call forward.
    packed = jax.tree_util.tree_map(
        lambda a: jax.block_until_ready(a) if isinstance(a, jax.Array) else a,
        pack_encoder_params(layer_params, final_norm, NHEAD))

    k1, k2 = jax.random.split(key)
    src = jax.random.normal(k1, (S, B, D), dtype=jnp.float32)
    pos = jax.random.normal(k2, (S, B, D), dtype=jnp.float32)

    out = transformer_encoder_forward(src, pos, packed)
    out = jax.block_until_ready(out)

    ref = _ref_forward(src, pos, layer_params, final_norm, NHEAD)
    assert out.shape == (S, B, D)
    # bf16 MXU operands + approx reciprocal => slightly looser tolerance than pure f32.
    err = float(jnp.max(jnp.abs(out - ref)))
    assert jnp.allclose(out, ref, atol=3e-2, rtol=3e-2), f"max abs err {err}"

    print("KERNEL_OK")
</pallas_src>

<mosaic_0001>
module attributes {stable_mosaic.version = 11 : i64} {
  func.func @fused_encoder_kernel(%arg0: i32, %arg1: memref<16x32xf32, #tpu.memory_space<vmem>>, %arg2: memref<16x32xf32, #tpu.memory_space<vmem>>, %arg3: memref<1x32x64xbf16, #tpu.memory_space<vmem>>, %arg4: memref<1x1x64xf32, #tpu.memory_space<vmem>>, %arg5: memref<1x32x32xbf16, #tpu.memory_space<vmem>>, %arg6: memref<1x1x32xf32, #tpu.memory_space<vmem>>, %arg7: memref<1x32x32xbf16, #tpu.memory_space<vmem>>, %arg8: memref<1x1x32xf32, #tpu.memory_space<vmem>>, %arg9: memref<1x1x32xf32, #tpu.memory_space<vmem>>, %arg10: memref<1x1x32xf32, #tpu.memory_space<vmem>>, %arg11: memref<1x32x64xbf16, #tpu.memory_space<vmem>>, %arg12: memref<1x1x64xf32, #tpu.memory_space<vmem>>, %arg13: memref<1x64x32xbf16, #tpu.memory_space<vmem>>, %arg14: memref<1x1x32xf32, #tpu.memory_space<vmem>>, %arg15: memref<1x1x32xf32, #tpu.memory_space<vmem>>, %arg16: memref<1x1x32xf32, #tpu.memory_space<vmem>>, %arg17: memref<1x32xf32, #tpu.memory_space<vmem>>, %arg18: memref<1x32xf32, #tpu.memory_space<vmem>>, %arg19: memref<16x32xf32, #tpu.memory_space<vmem>>, %arg20: memref<16x32xf32, #tpu.memory_space<vmem>>) attributes {dimension_semantics = [#tpu.dimension_semantics<arbitrary>], iteration_bounds = array<i64: 2>, scalar_prefetch = 0 : i64, scratch_operands = 1 : i64, tpu.core_type = #tpu.core_type<tc>, window_params = [{pipeline_mode = #tpu.pipeline_mode<synchronous>, transform_indices = @transform_0, window_bounds = array<i64: 16, 32>}, {pipeline_mode = #tpu.pipeline_mode<synchronous>, transform_indices = @transform_1, window_bounds = array<i64: 16, 32>}, {transform_indices = @transform_2, window_bounds = array<i64: 1, 32, 64>}, {transform_indices = @transform_3, window_bounds = array<i64: 1, 1, 64>}, {transform_indices = @transform_4, window_bounds = array<i64: 1, 32, 32>}, {transform_indices = @transform_5, window_bounds = array<i64: 1, 1, 32>}, {transform_indices = @transform_6, window_bounds = array<i64: 1, 32, 32>}, {transform_indices = @transform_7, window_bounds = array<i64: 1, 1, 32>}, {transform_indices = @transform_8, window_bounds = array<i64: 1, 1, 32>}, {transform_indices = @transform_9, window_bounds = array<i64: 1, 1, 32>}, {transform_indices = @transform_10, window_bounds = array<i64: 1, 32, 64>}, {transform_indices = @transform_11, window_bounds = array<i64: 1, 1, 64>}, {transform_indices = @transform_12, window_bounds = array<i64: 1, 64, 32>}, {transform_indices = @transform_13, window_bounds = array<i64: 1, 1, 32>}, {transform_indices = @transform_14, window_bounds = array<i64: 1, 1, 32>}, {transform_indices = @transform_15, window_bounds = array<i64: 1, 1, 32>}, {pipeline_mode = #tpu.pipeline_mode<synchronous>, transform_indices = @transform_16, window_bounds = array<i64: 1, 32>}, {pipeline_mode = #tpu.pipeline_mode<synchronous>, transform_indices = @transform_17, window_bounds = array<i64: 1, 32>}, {pipeline_mode = #tpu.pipeline_mode<synchronous>, transform_indices = @transform_18, window_bounds = array<i64: 16, 32>}]} {
    %c0_i32 = arith.constant 0 : i32
    %0 = arith.cmpi eq, %arg0, %c0_i32 : i32
    %1 = arith.extui %0 : i1 to i32
    %c0_i32_0 = arith.constant 0 : i32
    %2 = arith.cmpi ne, %1, %c0_i32_0 : i32
    scf.if %2 {
      %c0_96 = arith.constant 0 : index
      %c0_97 = arith.constant 0 : index
      %242 = vector.load %arg1[%c0_96, %c0_97] : memref<16x32xf32, #tpu.memory_space<vmem>>, vector<16x32xf32>
      %c0_98 = arith.constant 0 : index
      %c0_99 = arith.constant 0 : index
      %243 = vector.load %arg20[%c0_98, %c0_99] : memref<16x32xf32, #tpu.memory_space<vmem>>, vector<16x32xf32>
      tpu.vector_store %arg20[%c0_98, %c0_99], %242 {strides = array<i32>} : memref<16x32xf32, #tpu.memory_space<vmem>>, vector<16x32xf32>,
    } else {
    }
    %c0 = arith.constant 0 : index
    %c0_1 = arith.constant 0 : index
    %3 = vector.load %arg20[%c0, %c0_1] : memref<16x32xf32, #tpu.memory_space<vmem>>, vector<16x32xf32>
    %c0_2 = arith.constant 0 : index
    %c0_3 = arith.constant 0 : index
    %4 = vector.load %arg2[%c0_2, %c0_3] : memref<16x32xf32, #tpu.memory_space<vmem>>, vector<16x32xf32>
    %5 = arith.addf %3, %4 : vector<16x32xf32>
    %6 = arith.truncf %5 : vector<16x32xf32> to vector<16x32xbf16>
    %7 = arith.truncf %3 : vector<16x32xf32> to vector<16x32xbf16>
    %c0_4 = arith.constant 0 : index
    %c0_5 = arith.constant 0 : index
    %c0_6 = arith.constant 0 : index
    %8 = vector.load %arg3[%c0_4, %c0_5, %c0_6] : memref<1x32x64xbf16, #tpu.memory_space<vmem>>, vector<1x32x64xbf16>
    %9 = vector.shape_cast %8 : vector<1x32x64xbf16> to vector<32x64xbf16>
    %cst = arith.constant dense<0.000000e+00> : vector<16x64xf32>
    %10 = tpu.matmul %6, %9, %cst {dimension_numbers = #tpu.dot_dimension_numbers<[1], [0], [0], [1], [0, 0, 1, 1], [], []>} : vector<16x32xbf16>, vector<32x64xbf16>, vector<16x64xf32> -> vector<16x64xf32>
    %c0_7 = arith.constant 0 : index
    %c0_8 = arith.constant 0 : index
    %c0_9 = arith.constant 0 : index
    %11 = vector.load %arg4[%c0_7, %c0_8, %c0_9] : memref<1x1x64xf32, #tpu.memory_space<vmem>>, vector<1x1x64xf32>
    %12 = vector.shape_cast %11 : vector<1x1x64xf32> to vector<1x64xf32>
    %13 = vector.broadcast %12 : vector<1x64xf32> to vector<16x64xf32>
    %14 = arith.addf %10, %13 : vector<16x64xf32>
    %c0_10 = arith.constant 0 : index
    %c0_11 = arith.constant 0 : index
    %c0_12 = arith.constant 0 : index
    %15 = vector.load %arg5[%c0_10, %c0_11, %c0_12] : memref<1x32x32xbf16, #tpu.memory_space<vmem>>, vector<1x32x32xbf16>
    %16 = vector.shape_cast %15 : vector<1x32x32xbf16> to vector<32x32xbf16>
    %cst_13 = arith.constant dense<0.000000e+00> : vector<16x32xf32>
    %17 = tpu.matmul %7, %16, %cst_13 {dimension_numbers = #tpu.dot_dimension_numbers<[1], [0], [0], [1], [0, 0, 1, 1], [], []>} : vector<16x32xbf16>, vector<32x32xbf16>, vector<16x32xf32> -> vector<16x32xf32>
    %c0_14 = arith.constant 0 : index
    %c0_15 = arith.constant 0 : index
    %c0_16 = arith.constant 0 : index
    %18 = vector.load %arg6[%c0_14, %c0_15, %c0_16] : memref<1x1x32xf32, #tpu.memory_space<vmem>>, vector<1x1x32xf32>
    %19 = vector.shape_cast %18 : vector<1x1x32xf32> to vector<1x32xf32>
    %20 = vector.broadcast %19 : vector<1x32xf32> to vector<16x32xf32>
    %21 = arith.addf %17, %20 : vector<16x32xf32>
    %22 = vector.extract_strided_slice %14 {offsets = [0, 0], sizes = [16, 32], strides = [1, 1]} : vector<16x64xf32> to vector<16x32xf32>
    %23 = arith.truncf %22 : vector<16x32xf32> to vector<16x32xbf16>
    %24 = vector.extract_strided_slice %14 {offsets = [0, 32], sizes = [16, 32], strides = [1, 1]} : vector<16x64xf32> to vector<16x32xf32>
    %25 = arith.truncf %24 : vector<16x32xf32> to vector<16x32xbf16>
    %26 = arith.truncf %21 : vector<16x32xf32> to vector<16x32xbf16>
    %27 = vector.extract_strided_slice %23 {offsets = [0, 0], sizes = [8, 8], strides = [1, 1]} : vector<16x32xbf16> to vector<8x8xbf16>
    %28 = vector.extract_strided_slice %25 {offsets = [0, 0], sizes = [8, 8], strides = [1, 1]} : vector<16x32xbf16> to vector<8x8xbf16>
    %cst_17 = arith.constant dense<0.000000e+00> : vector<8x8xf32>
    %29 = tpu.matmul %27, %28, %cst_17 {dimension_numbers = #tpu.dot_dimension_numbers<[1], [1], [0], [0], [0, 0, 1, 0], [], []>} : vector<8x8xbf16>, vector<8x8xbf16>, vector<8x8xf32> -> vector<8x8xf32>
    %cst_18 = arith.constant dense<0xFF800000> : vector<8xf32>
    %30 = vector.multi_reduction <maximumf>, %29, %cst_18 [1] : vector<8x8xf32> to vector<8xf32>
    %31 = vector.shape_cast %30 : vector<8xf32> to vector<8x1xf32>
    %32 = vector.broadcast %31 : vector<8x1xf32> to vector<8x8xf32>
    %33 = arith.subf %29, %32 : vector<8x8xf32>
    %34 = math.exp %33 : vector<8x8xf32>
    %cst_19 = arith.constant dense<0.000000e+00> : vector<8xf32>
    %35 = vector.multi_reduction <add>, %34, %cst_19 [1] : vector<8x8xf32> to vector<8xf32>
    %36 = vector.shape_cast %35 : vector<8xf32> to vector<8x1xf32>
    %37 = tpu.reciprocal %36 {approx = true} : vector<8x1xf32> -> vector<8x1xf32>
    %38 = vector.broadcast %37 : vector<8x1xf32> to vector<8x8xf32>
    %39 = arith.mulf %34, %38 : vector<8x8xf32>
    %40 = arith.truncf %39 : vector<8x8xf32> to vector<8x8xbf16>
    %41 = vector.extract_strided_slice %26 {offsets = [0, 0], sizes = [8, 8], strides = [1, 1]} : vector<16x32xbf16> to vector<8x8xbf16>
    %cst_20 = arith.constant dense<0.000000e+00> : vector<8x8xf32>
    %42 = tpu.matmul %40, %41, %cst_20 {dimension_numbers = #tpu.dot_dimension_numbers<[1], [0], [0], [1], [0, 0, 1, 1], [], []>} : vector<8x8xbf16>, vector<8x8xbf16>, vector<8x8xf32> -> vector<8x8xf32>
    %43 = vector.extract_strided_slice %23 {offsets = [0, 8], sizes = [8, 8], strides = [1, 1]} : vector<16x32xbf16> to vector<8x8xbf16>
    %44 = vector.extract_strided_slice %25 {offsets = [0, 8], sizes = [8, 8], strides = [1, 1]} : vector<16x32xbf16> to vector<8x8xbf16>
    %cst_21 = arith.constant dense<0.000000e+00> : vector<8x8xf32>
    %45 = tpu.matmul %43, %44, %cst_21 {dimension_numbers = #tpu.dot_dimension_numbers<[1], [1], [0], [0], [0, 0, 1, 0], [], []>} : vector<8x8xbf16>, vector<8x8xbf16>, vector<8x8xf32> -> vector<8x8xf32>
    %cst_22 = arith.constant dense<0xFF800000> : vector<8xf32>
    %46 = vector.multi_reduction <maximumf>, %45, %cst_22 [1] : vector<8x8xf32> to vector<8xf32>
    %47 = vector.shape_cast %46 : vector<8xf32> to vector<8x1xf32>
    %48 = vector.broadcast %47 : vector<8x1xf32> to vector<8x8xf32>
    %49 = arith.subf %45, %48 : vector<8x8xf32>
    %50 = math.exp %49 : vector<8x8xf32>
    %cst_23 = arith.constant dense<0.000000e+00> : vector<8xf32>
    %51 = vector.multi_reduction <add>, %50, %cst_23 [1] : vector<8x8xf32> to vector<8xf32>
    %52 = vector.shape_cast %51 : vector<8xf32> to vector<8x1xf32>
    %53 = tpu.reciprocal %52 {approx = true} : vector<8x1xf32> -> vector<8x1xf32>
    %54 = vector.broadcast %53 : vector<8x1xf32> to vector<8x8xf32>
    %55 = arith.mulf %50, %54 : vector<8x8xf32>
    %56 = arith.truncf %55 : vector<8x8xf32> to vector<8x8xbf16>
    %57 = vector.extract_strided_slice %26 {offsets = [0, 8], sizes = [8, 8], strides = [1, 1]} : vector<16x32xbf16> to vector<8x8xbf16>
    %cst_24 = arith.constant dense<0.000000e+00> : vector<8x8xf32>
    %58 = tpu.matmul %56, %57, %cst_24 {dimension_numbers = #tpu.dot_dimension_numbers<[1], [0], [0], [1], [0, 0, 1, 1], [], []>} : vector<8x8xbf16>, vector<8x8xbf16>, vector<8x8xf32> -> vector<8x8xf32>
    %59 = vector.extract_strided_slice %23 {offsets = [0, 16], sizes = [8, 8], strides = [1, 1]} : vector<16x32xbf16> to vector<8x8xbf16>
    %60 = vector.extract_strided_slice %25 {offsets = [0, 16], sizes = [8, 8], strides = [1, 1]} : vector<16x32xbf16> to vector<8x8xbf16>
    %cst_25 = arith.constant dense<0.000000e+00> : vector<8x8xf32>
    %61 = tpu.matmul %59, %60, %cst_25 {dimension_numbers = #tpu.dot_dimension_numbers<[1], [1], [0], [0], [0, 0, 1, 0], [], []>} : vector<8x8xbf16>, vector<8x8xbf16>, vector<8x8xf32> -> vector<8x8xf32>
    %cst_26 = arith.constant dense<0xFF800000> : vector<8xf32>
    %62 = vector.multi_reduction <maximumf>, %61, %cst_26 [1] : vector<8x8xf32> to vector<8xf32>
    %63 = vector.shape_cast %62 : vector<8xf32> to vector<8x1xf32>
    %64 = vector.broadcast %63 : vector<8x1xf32> to vector<8x8xf32>
    %65 = arith.subf %61, %64 : vector<8x8xf32>
    %66 = math.exp %65 : vector<8x8xf32>
    %cst_27 = arith.constant dense<0.000000e+00> : vector<8xf32>
    %67 = vector.multi_reduction <add>, %66, %cst_27 [1] : vector<8x8xf32> to vector<8xf32>
    %68 = vector.shape_cast %67 : vector<8xf32> to vector<8x1xf32>
    %69 = tpu.reciprocal %68 {approx = true} : vector<8x1xf32> -> vector<8x1xf32>
    %70 = vector.broadcast %69 : vector<8x1xf32> to vector<8x8xf32>
    %71 = arith.mulf %66, %70 : vector<8x8xf32>
    %72 = arith.truncf %71 : vector<8x8xf32> to vector<8x8xbf16>
    %73 = vector.extract_strided_slice %26 {offsets = [0, 16], sizes = [8, 8], strides = [1, 1]} : vector<16x32xbf16> to vector<8x8xbf16>
    %cst_28 = arith.constant dense<0.000000e+00> : vector<8x8xf32>
    %74 = tpu.matmul %72, %73, %cst_28 {dimension_numbers = #tpu.dot_dimension_numbers<[1], [0], [0], [1], [0, 0, 1, 1], [], []>} : vector<8x8xbf16>, vector<8x8xbf16>, vector<8x8xf32> -> vector<8x8xf32>
    %75 = vector.extract_strided_slice %23 {offsets = [0, 24], sizes = [8, 8], strides = [1, 1]} : vector<16x32xbf16> to vector<8x8xbf16>
    %76 = vector.extract_strided_slice %25 {offsets = [0, 24], sizes = [8, 8], strides = [1, 1]} : vector<16x32xbf16> to vector<8x8xbf16>
    %cst_29 = arith.constant dense<0.000000e+00> : vector<8x8xf32>
    %77 = tpu.matmul %75, %76, %cst_29 {dimension_numbers = #tpu.dot_dimension_numbers<[1], [1], [0], [0], [0, 0, 1, 0], [], []>} : vector<8x8xbf16>, vector<8x8xbf16>, vector<8x8xf32> -> vector<8x8xf32>
    %cst_30 = arith.constant dense<0xFF800000> : vector<8xf32>
    %78 = vector.multi_reduction <maximumf>, %77, %cst_30 [1] : vector<8x8xf32> to vector<8xf32>
    %79 = vector.shape_cast %78 : vector<8xf32> to vector<8x1xf32>
    %80 = vector.broadcast %79 : vector<8x1xf32> to vector<8x8xf32>
    %81 = arith.subf %77, %80 : vector<8x8xf32>
    %82 = math.exp %81 : vector<8x8xf32>
    %cst_31 = arith.constant dense<0.000000e+00> : vector<8xf32>
    %83 = vector.multi_reduction <add>, %82, %cst_31 [1] : vector<8x8xf32> to vector<8xf32>
    %84 = vector.shape_cast %83 : vector<8xf32> to vector<8x1xf32>
    %85 = tpu.reciprocal %84 {approx = true} : vector<8x1xf32> -> vector<8x1xf32>
    %86 = vector.broadcast %85 : vector<8x1xf32> to vector<8x8xf32>
    %87 = arith.mulf %82, %86 : vector<8x8xf32>
    %88 = arith.truncf %87 : vector<8x8xf32> to vector<8x8xbf16>
    %89 = vector.extract_strided_slice %26 {offsets = [0, 24], sizes = [8, 8], strides = [1, 1]} : vector<16x32xbf16> to vector<8x8xbf16>
    %cst_32 = arith.constant dense<0.000000e+00> : vector<8x8xf32>
    %90 = tpu.matmul %88, %89, %cst_32 {dimension_numbers = #tpu.dot_dimension_numbers<[1], [0], [0], [1], [0, 0, 1, 1], [], []>} : vector<8x8xbf16>, vector<8x8xbf16>, vector<8x8xf32> -> vector<8x8xf32>
    %91 = tpu.concatenate %42, %58, %74, %90 in 1 : vector<8x8xf32>, vector<8x8xf32>, vector<8x8xf32>, vector<8x8xf32> -> vector<8x32xf32>
    %92 = vector.extract_strided_slice %23 {offsets = [8, 0], sizes = [8, 8], strides = [1, 1]} : vector<16x32xbf16> to vector<8x8xbf16>
    %93 = vector.extract_strided_slice %25 {offsets = [8, 0], sizes = [8, 8], strides = [1, 1]} : vector<16x32xbf16> to vector<8x8xbf16>
    %cst_33 = arith.constant dense<0.000000e+00> : vector<8x8xf32>
    %94 = tpu.matmul %92, %93, %cst_33 {dimension_numbers = #tpu.dot_dimension_numbers<[1], [1], [0], [0], [0, 0, 1, 0], [], []>} : vector<8x8xbf16>, vector<8x8xbf16>, vector<8x8xf32> -> vector<8x8xf32>
    %cst_34 = arith.constant dense<0xFF800000> : vector<8xf32>
    %95 = vector.multi_reduction <maximumf>, %94, %cst_34 [1] : vector<8x8xf32> to vector<8xf32>
    %96 = vector.shape_cast %95 : vector<8xf32> to vector<8x1xf32>
    %97 = vector.broadcast %96 : vector<8x1xf32> to vector<8x8xf32>
    %98 = arith.subf %94, %97 : vector<8x8xf32>
    %99 = math.exp %98 : vector<8x8xf32>
    %cst_35 = arith.constant dense<0.000000e+00> : vector<8xf32>
    %100 = vector.multi_reduction <add>, %99, %cst_35 [1] : vector<8x8xf32> to vector<8xf32>
    %101 = vector.shape_cast %100 : vector<8xf32> to vector<8x1xf32>
    %102 = tpu.reciprocal %101 {approx = true} : vector<8x1xf32> -> vector<8x1xf32>
    %103 = vector.broadcast %102 : vector<8x1xf32> to vector<8x8xf32>
    %104 = arith.mulf %99, %103 : vector<8x8xf32>
    %105 = arith.truncf %104 : vector<8x8xf32> to vector<8x8xbf16>
    %106 = vector.extract_strided_slice %26 {offsets = [8, 0], sizes = [8, 8], strides = [1, 1]} : vector<16x32xbf16> to vector<8x8xbf16>
    %cst_36 = arith.constant dense<0.000000e+00> : vector<8x8xf32>
    %107 = tpu.matmul %105, %106, %cst_36 {dimension_numbers = #tpu.dot_dimension_numbers<[1], [0], [0], [1], [0, 0, 1, 1], [], []>} : vector<8x8xbf16>, vector<8x8xbf16>, vector<8x8xf32> -> vector<8x8xf32>
    %108 = vector.extract_strided_slice %23 {offsets = [8, 8], sizes = [8, 8], strides = [1, 1]} : vector<16x32xbf16> to vector<8x8xbf16>
    %109 = vector.extract_strided_slice %25 {offsets = [8, 8], sizes = [8, 8], strides = [1, 1]} : vector<16x32xbf16> to vector<8x8xbf16>
    %cst_37 = arith.constant dense<0.000000e+00> : vector<8x8xf32>
    %110 = tpu.matmul %108, %109, %cst_37 {dimension_numbers = #tpu.dot_dimension_numbers<[1], [1], [0], [0], [0, 0, 1, 0], [], []>} : vector<8x8xbf16>, vector<8x8xbf16>, vector<8x8xf32> -> vector<8x8xf32>
    %cst_38 = arith.constant dense<0xFF800000> : vector<8xf32>
    %111 = vector.multi_reduction <maximumf>, %110, %cst_38 [1] : vector<8x8xf32> to vector<8xf32>
    %112 = vector.shape_cast %111 : vector<8xf32> to vector<8x1xf32>
    %113 = vector.broadcast %112 : vector<8x1xf32> to vector<8x8xf32>
    %114 = arith.subf %110, %113 : vector<8x8xf32>
    %115 = math.exp %114 : vector<8x8xf32>
    %cst_39 = arith.constant dense<0.000000e+00> : vector<8xf32>
    %116 = vector.multi_reduction <add>, %115, %cst_39 [1] : vector<8x8xf32> to vector<8xf32>
    %117 = vector.shape_cast %116 : vector<8xf32> to vector<8x1xf32>
    %118 = tpu.reciprocal %117 {approx = true} : vector<8x1xf32> -> vector<8x1xf32>
    %119 = vector.broadcast %118 : vector<8x1xf32> to vector<8x8xf32>
    %120 = arith.mulf %115, %119 : vector<8x8xf32>
    %121 = arith.truncf %120 : vector<8x8xf32> to vector<8x8xbf16>
    %122 = vector.extract_strided_slice %26 {offsets = [8, 8], sizes = [8, 8], strides = [1, 1]} : vector<16x32xbf16> to vector<8x8xbf16>
    %cst_40 = arith.constant dense<0.000000e+00> : vector<8x8xf32>
    %123 = tpu.matmul %121, %122, %cst_40 {dimension_numbers = #tpu.dot_dimension_numbers<[1], [0], [0], [1], [0, 0, 1, 1], [], []>} : vector<8x8xbf16>, vector<8x8xbf16>, vector<8x8xf32> -> vector<8x8xf32>
    %124 = vector.extract_strided_slice %23 {offsets = [8, 16], sizes = [8, 8], strides = [1, 1]} : vector<16x32xbf16> to vector<8x8xbf16>
    %125 = vector.extract_strided_slice %25 {offsets = [8, 16], sizes = [8, 8], strides = [1, 1]} : vector<16x32xbf16> to vector<8x8xbf16>
    %cst_41 = arith.constant dense<0.000000e+00> : vector<8x8xf32>
    %126 = tpu.matmul %124, %125, %cst_41 {dimension_numbers = #tpu.dot_dimension_numbers<[1], [1], [0], [0], [0, 0, 1, 0], [], []>} : vector<8x8xbf16>, vector<8x8xbf16>, vector<8x8xf32> -> vector<8x8xf32>
    %cst_42 = arith.constant dense<0xFF800000> : vector<8xf32>
    %127 = vector.multi_reduction <maximumf>, %126, %cst_42 [1] : vector<8x8xf32> to vector<8xf32>
    %128 = vector.shape_cast %127 : vector<8xf32> to vector<8x1xf32>
    %129 = vector.broadcast %128 : vector<8x1xf32> to vector<8x8xf32>
    %130 = arith.subf %126, %129 : vector<8x8xf32>
    %131 = math.exp %130 : vector<8x8xf32>
    %cst_43 = arith.constant dense<0.000000e+00> : vector<8xf32>
    %132 = vector.multi_reduction <add>, %131, %cst_43 [1] : vector<8x8xf32> to vector<8xf32>
    %133 = vector.shape_cast %132 : vector<8xf32> to vector<8x1xf32>
    %134 = tpu.reciprocal %133 {approx = true} : vector<8x1xf32> -> vector<8x1xf32>
    %135 = vector.broadcast %134 : vector<8x1xf32> to vector<8x8xf32>
    %136 = arith.mulf %131, %135 : vector<8x8xf32>
    %137 = arith.truncf %136 : vector<8x8xf32> to vector<8x8xbf16>
    %138 = vector.extract_strided_slice %26 {offsets = [8, 16], sizes = [8, 8], strides = [1, 1]} : vector<16x32xbf16> to vector<8x8xbf16>
    %cst_44 = arith.constant dense<0.000000e+00> : vector<8x8xf32>
    %139 = tpu.matmul %137, %138, %cst_44 {dimension_numbers = #tpu.dot_dimension_numbers<[1], [0], [0], [1], [0, 0, 1, 1], [], []>} : vector<8x8xbf16>, vector<8x8xbf16>, vector<8x8xf32> -> vector<8x8xf32>
    %140 = vector.extract_strided_slice %23 {offsets = [8, 24], sizes = [8, 8], strides = [1, 1]} : vector<16x32xbf16> to vector<8x8xbf16>
    %141 = vector.extract_strided_slice %25 {offsets = [8, 24], sizes = [8, 8], strides = [1, 1]} : vector<16x32xbf16> to vector<8x8xbf16>
    %cst_45 = arith.constant dense<0.000000e+00> : vector<8x8xf32>
    %142 = tpu.matmul %140, %141, %cst_45 {dimension_numbers = #tpu.dot_dimension_numbers<[1], [1], [0], [0], [0, 0, 1, 0], [], []>} : vector<8x8xbf16>, vector<8x8xbf16>, vector<8x8xf32> -> vector<8x8xf32>
    %cst_46 = arith.constant dense<0xFF800000> : vector<8xf32>
    %143 = vector.multi_reduction <maximumf>, %142, %cst_46 [1] : vector<8x8xf32> to vector<8xf32>
    %144 = vector.shape_cast %143 : vector<8xf32> to vector<8x1xf32>
    %145 = vector.broadcast %144 : vector<8x1xf32> to vector<8x8xf32>
    %146 = arith.subf %142, %145 : vector<8x8xf32>
    %147 = math.exp %146 : vector<8x8xf32>
    %cst_47 = arith.constant dense<0.000000e+00> : vector<8xf32>
    %148 = vector.multi_reduction <add>, %147, %cst_47 [1] : vector<8x8xf32> to vector<8xf32>
    %149 = vector.shape_cast %148 : vector<8xf32> to vector<8x1xf32>
    %150 = tpu.reciprocal %149 {approx = true} : vector<8x1xf32> -> vector<8x1xf32>
    %151 = vector.broadcast %150 : vector<8x1xf32> to vector<8x8xf32>
    %152 = arith.mulf %147, %151 : vector<8x8xf32>
    %153 = arith.truncf %152 : vector<8x8xf32> to vector<8x8xbf16>
    %154 = vector.extract_strided_slice %26 {offsets = [8, 24], sizes = [8, 8], strides = [1, 1]} : vector<16x32xbf16> to vector<8x8xbf16>
    %cst_48 = arith.constant dense<0.000000e+00> : vector<8x8xf32>
    %155 = tpu.matmul %153, %154, %cst_48 {dimension_numbers = #tpu.dot_dimension_numbers<[1], [0], [0], [1], [0, 0, 1, 1], [], []>} : vector<8x8xbf16>, vector<8x8xbf16>, vector<8x8xf32> -> vector<8x8xf32>
    %156 = tpu.concatenate %107, %123, %139, %155 in 1 : vector<8x8xf32>, vector<8x8xf32>, vector<8x8xf32>, vector<8x8xf32> -> vector<8x32xf32>
    %157 = tpu.concatenate %91, %156 in 0 : vector<8x32xf32>, vector<8x32xf32> -> vector<16x32xf32>
    %158 = arith.truncf %157 : vector<16x32xf32> to vector<16x32xbf16>
    %c0_49 = arith.constant 0 : index
    %c0_50 = arith.constant 0 : index
    %c0_51 = arith.constant 0 : index
    %159 = vector.load %arg7[%c0_49, %c0_50, %c0_51] : memref<1x32x32xbf16, #tpu.memory_space<vmem>>, vector<1x32x32xbf16>
    %160 = vector.shape_cast %159 : vector<1x32x32xbf16> to vector<32x32xbf16>
    %cst_52 = arith.constant dense<0.000000e+00> : vector<16x32xf32>
    %161 = tpu.matmul %158, %160, %cst_52 {dimension_numbers = #tpu.dot_dimension_numbers<[1], [0], [0], [1], [0, 0, 1, 1], [], []>} : vector<16x32xbf16>, vector<32x32xbf16>, vector<16x32xf32> -> vector<16x32xf32>
    %c0_53 = arith.constant 0 : index
    %c0_54 = arith.constant 0 : index
    %c0_55 = arith.constant 0 : index
    %162 = vector.load %arg8[%c0_53, %c0_54, %c0_55] : memref<1x1x32xf32, #tpu.memory_space<vmem>>, vector<1x1x32xf32>
    %163 = vector.shape_cast %162 : vector<1x1x32xf32> to vector<1x32xf32>
    %164 = vector.broadcast %163 : vector<1x32xf32> to vector<16x32xf32>
    %165 = arith.addf %161, %164 : vector<16x32xf32>
    %166 = arith.addf %3, %165 : vector<16x32xf32>
    %c0_56 = arith.constant 0 : index
    %c0_57 = arith.constant 0 : index
    %c0_58 = arith.constant 0 : index
    %167 = vector.load %arg9[%c0_56, %c0_57, %c0_58] : memref<1x1x32xf32, #tpu.memory_space<vmem>>, vector<1x1x32xf32>
    %168 = vector.shape_cast %167 : vector<1x1x32xf32> to vector<1x32xf32>
    %c0_59 = arith.constant 0 : index
    %c0_60 = arith.constant 0 : index
    %c0_61 = arith.constant 0 : index
    %169 = vector.load %arg10[%c0_59, %c0_60, %c0_61] : memref<1x1x32xf32, #tpu.memory_space<vmem>>, vector<1x1x32xf32>
    %170 = vector.shape_cast %169 : vector<1x1x32xf32> to vector<1x32xf32>
    %cst_62 = arith.constant dense<0.000000e+00> : vector<16xf32>
    %171 = vector.multi_reduction <add>, %166, %cst_62 [1] : vector<16x32xf32> to vector<16xf32>
    %172 = vector.shape_cast %171 : vector<16xf32> to vector<16x1xf32>
    %cst_63 = arith.constant 3.200000e+01 : f32
    %173 = vector.broadcast %cst_63 : f32 to vector<16x1xf32>
    %174 = arith.divf %172, %173 : vector<16x1xf32>
    %175 = vector.broadcast %174 : vector<16x1xf32> to vector<16x32xf32>
    %176 = arith.subf %166, %175 : vector<16x32xf32>
    %177 = arith.mulf %176, %176 : vector<16x32xf32>
    %cst_64 = arith.constant dense<0.000000e+00> : vector<16xf32>
    %178 = vector.multi_reduction <add>, %177, %cst_64 [1] : vector<16x32xf32> to vector<16xf32>
    %179 = vector.shape_cast %178 : vector<16xf32> to vector<16x1xf32>
    %cst_65 = arith.constant 3.200000e+01 : f32
    %180 = vector.broadcast %cst_65 : f32 to vector<16x1xf32>
    %181 = arith.divf %179, %180 : vector<16x1xf32>
    %182 = vector.broadcast %174 : vector<16x1xf32> to vector<16x32xf32>
    %183 = arith.subf %166, %182 : vector<16x32xf32>
    %cst_66 = arith.constant 9.99999974E-6 : f32
    %184 = vector.broadcast %cst_66 : f32 to vector<16x1xf32>
    %185 = arith.addf %181, %184 : vector<16x1xf32>
    %186 = math.rsqrt %185 : vector<16x1xf32>
    %187 = vector.broadcast %186 : vector<16x1xf32> to vector<16x32xf32>
    %188 = arith.mulf %183, %187 : vector<16x32xf32>
    %189 = vector.broadcast %168 : vector<1x32xf32> to vector<16x32xf32>
    %190 = arith.mulf %188, %189 : vector<16x32xf32>
    %191 = vector.broadcast %170 : vector<1x32xf32> to vector<16x32xf32>
    %192 = arith.addf %190, %191 : vector<16x32xf32>
    %193 = arith.truncf %192 : vector<16x32xf32> to vector<16x32xbf16>
    %c0_67 = arith.constant 0 : index
    %c0_68 = arith.constant 0 : index
    %c0_69 = arith.constant 0 : index
    %194 = vector.load %arg11[%c0_67, %c0_68, %c0_69] : memref<1x32x64xbf16, #tpu.memory_space<vmem>>, vector<1x32x64xbf16>
    %195 = vector.shape_cast %194 : vector<1x32x64xbf16> to vector<32x64xbf16>
    %cst_70 = arith.constant dense<0.000000e+00> : vector<16x64xf32>
    %196 = tpu.matmul %193, %195, %cst_70 {dimension_numbers = #tpu.dot_dimension_numbers<[1], [0], [0], [1], [0, 0, 1, 1], [], []>} : vector<16x32xbf16>, vector<32x64xbf16>, vector<16x64xf32> -> vector<16x64xf32>
    %c0_71 = arith.constant 0 : index
    %c0_72 = arith.constant 0 : index
    %c0_73 = arith.constant 0 : index
    %197 = vector.load %arg12[%c0_71, %c0_72, %c0_73] : memref<1x1x64xf32, #tpu.memory_space<vmem>>, vector<1x1x64xf32>
    %198 = vector.shape_cast %197 : vector<1x1x64xf32> to vector<1x64xf32>
    %199 = vector.broadcast %198 : vector<1x64xf32> to vector<16x64xf32>
    %200 = arith.addf %196, %199 : vector<16x64xf32>
    %cst_74 = arith.constant 0.000000e+00 : f32
    %201 = vector.broadcast %cst_74 : f32 to vector<16x64xf32>
    %202 = arith.maximumf %200, %201 : vector<16x64xf32>
    %203 = arith.truncf %202 : vector<16x64xf32> to vector<16x64xbf16>
    %c0_75 = arith.constant 0 : index
    %c0_76 = arith.constant 0 : index
    %c0_77 = arith.constant 0 : index
    %204 = vector.load %arg13[%c0_75, %c0_76, %c0_77] : memref<1x64x32xbf16, #tpu.memory_space<vmem>>, vector<1x64x32xbf16>
    %205 = vector.shape_cast %204 : vector<1x64x32xbf16> to vector<64x32xbf16>
    %cst_78 = arith.constant dense<0.000000e+00> : vector<16x32xf32>
    %206 = tpu.matmul %203, %205, %cst_78 {dimension_numbers = #tpu.dot_dimension_numbers<[1], [0], [0], [1], [0, 0, 1, 1], [], []>} : vector<16x64xbf16>, vector<64x32xbf16>, vector<16x32xf32> -> vector<16x32xf32>
    %c0_79 = arith.constant 0 : index
    %c0_80 = arith.constant 0 : index
    %c0_81 = arith.constant 0 : index
    %207 = vector.load %arg14[%c0_79, %c0_80, %c0_81] : memref<1x1x32xf32, #tpu.memory_space<vmem>>, vector<1x1x32xf32>
    %208 = vector.shape_cast %207 : vector<1x1x32xf32> to vector<1x32xf32>
    %209 = vector.broadcast %208 : vector<1x32xf32> to vector<16x32xf32>
    %210 = arith.addf %206, %209 : vector<16x32xf32>
    %211 = arith.addf %192, %210 : vector<16x32xf32>
    %c0_82 = arith.constant 0 : index
    %c0_83 = arith.constant 0 : index
    %c0_84 = arith.constant 0 : index
    %212 = vector.load %arg15[%c0_82, %c0_83, %c0_84] : memref<1x1x32xf32, #tpu.memory_space<vmem>>, vector<1x1x32xf32>
    %213 = vector.shape_cast %212 : vector<1x1x32xf32> to vector<1x32xf32>
    %c0_85 = arith.constant 0 : index
    %c0_86 = arith.constant 0 : index
    %c0_87 = arith.constant 0 : index
    %214 = vector.load %arg16[%c0_85, %c0_86, %c0_87] : memref<1x1x32xf32, #tpu.memory_space<vmem>>, vector<1x1x32xf32>
    %215 = vector.shape_cast %214 : vector<1x1x32xf32> to vector<1x32xf32>
    %cst_88 = arith.constant dense<0.000000e+00> : vector<16xf32>
    %216 = vector.multi_reduction <add>, %211, %cst_88 [1] : vector<16x32xf32> to vector<16xf32>
    %217 = vector.shape_cast %216 : vector<16xf32> to vector<16x1xf32>
    %cst_89 = arith.constant 3.200000e+01 : f32
    %218 = vector.broadcast %cst_89 : f32 to vector<16x1xf32>
    %219 = arith.divf %217, %218 : vector<16x1xf32>
    %220 = vector.broadcast %219 : vector<16x1xf32> to vector<16x32xf32>
    %221 = arith.subf %211, %220 : vector<16x32xf32>
    %222 = arith.mulf %221, %221 : vector<16x32xf32>
    %cst_90 = arith.constant dense<0.000000e+00> : vector<16xf32>
    %223 = vector.multi_reduction <add>, %222, %cst_90 [1] : vector<16x32xf32> to vector<16xf32>
    %224 = vector.shape_cast %223 : vector<16xf32> to vector<16x1xf32>
    %cst_91 = arith.constant 3.200000e+01 : f32
    %225 = vector.broadcast %cst_91 : f32 to vector<16x1xf32>
    %226 = arith.divf %224, %225 : vector<16x1xf32>
    %227 = vector.broadcast %219 : vector<16x1xf32> to vector<16x32xf32>
    %228 = arith.subf %211, %227 : vector<16x32xf32>
    %cst_92 = arith.constant 9.99999974E-6 : f32
    %229 = vector.broadcast %cst_92 : f32 to vector<16x1xf32>
    %230 = arith.addf %226, %229 : vector<16x1xf32>
    %231 = math.rsqrt %230 : vector<16x1xf32>
    %232 = vector.broadcast %231 : vector<16x1xf32> to vector<16x32xf32>
    %233 = arith.mulf %228, %232 : vector<16x32xf32>
    %234 = vector.broadcast %213 : vector<1x32xf32> to vector<16x32xf32>
    %235 = arith.mulf %233, %234 : vector<16x32xf32>
    %236 = vector.broadcast %215 : vector<1x32xf32> to vector<16x32xf32>
    %237 = arith.addf %235, %236 : vector<16x32xf32>
    %c0_93 = arith.constant 0 : index
    %c0_94 = arith.constant 0 : index
    %238 = vector.load %arg20[%c0_93, %c0_94] : memref<16x32xf32, #tpu.memory_space<vmem>>, vector<16x32xf32>
    tpu.vector_store %arg20[%c0_93, %c0_94], %237 {strides = array<i32>} : memref<16x32xf32, #tpu.memory_space<vmem>>, vector<16x32xf32>,
    %c1_i32 = arith.constant 1 : i32
    %239 = arith.cmpi eq, %arg0, %c1_i32 : i32
    %240 = arith.extui %239 : i1 to i32
    %c0_i32_95 = arith.constant 0 : i32
    %241 = arith.cmpi ne, %240, %c0_i32_95 : i32
    scf.if %241 {
      %c0_96 = arith.constant 0 : index
      %c0_97 = arith.constant 0 : index
      %242 = vector.load %arg17[%c0_96, %c0_97] : memref<1x32xf32, #tpu.memory_space<vmem>>, vector<1x32xf32>
      %c0_98 = arith.constant 0 : index
      %c0_99 = arith.constant 0 : index
      %243 = vector.load %arg18[%c0_98, %c0_99] : memref<1x32xf32, #tpu.memory_space<vmem>>, vector<1x32xf32>
      %cst_100 = arith.constant dense<0.000000e+00> : vector<16xf32>
      %244 = vector.multi_reduction <add>, %237, %cst_100 [1] : vector<16x32xf32> to vector<16xf32>
      %245 = vector.shape_cast %244 : vector<16xf32> to vector<16x1xf32>
      %cst_101 = arith.constant 3.200000e+01 : f32
      %246 = vector.broadcast %cst_101 : f32 to vector<16x1xf32>
      %247 = arith.divf %245, %246 : vector<16x1xf32>
      %248 = vector.broadcast %247 : vector<16x1xf32> to vector<16x32xf32>
      %249 = arith.subf %237, %248 : vector<16x32xf32>
      %250 = arith.mulf %249, %249 : vector<16x32xf32>
      %cst_102 = arith.constant dense<0.000000e+00> : vector<16xf32>
      %251 = vector.multi_reduction <add>, %250, %cst_102 [1] : vector<16x32xf32> to vector<16xf32>
      %252 = vector.shape_cast %251 : vector<16xf32> to vector<16x1xf32>
      %cst_103 = arith.constant 3.200000e+01 : f32
      %253 = vector.broadcast %cst_103 : f32 to vector<16x1xf32>
      %254 = arith.divf %252, %253 : vector<16x1xf32>
      %255 = vector.broadcast %247 : vector<16x1xf32> to vector<16x32xf32>
      %256 = arith.subf %237, %255 : vector<16x32xf32>
      %cst_104 = arith.constant 9.99999974E-6 : f32
      %257 = vector.broadcast %cst_104 : f32 to vector<16x1xf32>
      %258 = arith.addf %254, %257 : vector<16x1xf32>
      %259 = math.rsqrt %258 : vector<16x1xf32>
      %260 = vector.broadcast %259 : vector<16x1xf32> to vector<16x32xf32>
      %261 = arith.mulf %256, %260 : vector<16x32xf32>
      %262 = vector.broadcast %242 : vector<1x32xf32> to vector<16x32xf32>
      %263 = arith.mulf %261, %262 : vector<16x32xf32>
      %264 = vector.broadcast %243 : vector<1x32xf32> to vector<16x32xf32>
      %265 = arith.addf %263, %264 : vector<16x32xf32>
      %c0_105 = arith.constant 0 : index
      %c0_106 = arith.constant 0 : index
      %266 = vector.load %arg19[%c0_105, %c0_106] : memref<16x32xf32, #tpu.memory_space<vmem>>, vector<16x32xf32>
      tpu.vector_store %arg19[%c0_105, %c0_106], %265 {strides = array<i32>} : memref<16x32xf32, #tpu.memory_space<vmem>>, vector<16x32xf32>,
    } else {
    }
    return
  }
  func.func @transform_0(%arg0: i32) -> (i32, i32) {
    %c0_i32 = arith.constant 0 : i32
    %c0_i32_0 = arith.constant 0 : i32
    %c0_i32_1 = arith.constant 0 : i32
    return %c0_i32, %c0_i32_0 : i32, i32
  }
  func.func @transform_1(%arg0: i32) -> (i32, i32) {
    %c0_i32 = arith.constant 0 : i32
    %c0_i32_0 = arith.constant 0 : i32
    %c0_i32_1 = arith.constant 0 : i32
    return %c0_i32, %c0_i32_0 : i32, i32
  }
  func.func @transform_2(%arg0: i32) -> (i32, i32, i32) {
    %c0_i32 = arith.constant 0 : i32
    %c0_i32_0 = arith.constant 0 : i32
    %c0_i32_1 = arith.constant 0 : i32
    return %arg0, %c0_i32, %c0_i32_0 : i32, i32, i32
  }
  func.func @transform_3(%arg0: i32) -> (i32, i32, i32) {
    %c0_i32 = arith.constant 0 : i32
    %c0_i32_0 = arith.constant 0 : i32
    %c0_i32_1 = arith.constant 0 : i32
    return %arg0, %c0_i32, %c0_i32_0 : i32, i32, i32
  }
  func.func @transform_4(%arg0: i32) -> (i32, i32, i32) {
    %c0_i32 = arith.constant 0 : i32
    %c0_i32_0 = arith.constant 0 : i32
    %c0_i32_1 = arith.constant 0 : i32
    return %arg0, %c0_i32, %c0_i32_0 : i32, i32, i32
  }
  func.func @transform_5(%arg0: i32) -> (i32, i32, i32) {
    %c0_i32 = arith.constant 0 : i32
    %c0_i32_0 = arith.constant 0 : i32
    %c0_i32_1 = arith.constant 0 : i32
    return %arg0, %c0_i32, %c0_i32_0 : i32, i32, i32
  }
  func.func @transform_6(%arg0: i32) -> (i32, i32, i32) {
    %c0_i32 = arith.constant 0 : i32
    %c0_i32_0 = arith.constant 0 : i32
    %c0_i32_1 = arith.constant 0 : i32
    return %arg0, %c0_i32, %c0_i32_0 : i32, i32, i32
  }
  func.func @transform_7(%arg0: i32) -> (i32, i32, i32) {
    %c0_i32 = arith.constant 0 : i32
    %c0_i32_0 = arith.constant 0 : i32
    %c0_i32_1 = arith.constant 0 : i32
    return %arg0, %c0_i32, %c0_i32_0 : i32, i32, i32
  }
  func.func @transform_8(%arg0: i32) -> (i32, i32, i32) {
    %c0_i32 = arith.constant 0 : i32
    %c0_i32_0 = arith.constant 0 : i32
    %c0_i32_1 = arith.constant 0 : i32
    return %arg0, %c0_i32, %c0_i32_0 : i32, i32, i32
  }
  func.func @transform_9(%arg0: i32) -> (i32, i32, i32) {
    %c0_i32 = arith.constant 0 : i32
    %c0_i32_0 = arith.constant 0 : i32
    %c0_i32_1 = arith.constant 0 : i32
    return %arg0, %c0_i32, %c0_i32_0 : i32, i32, i32
  }
  func.func @transform_10(%arg0: i32) -> (i32, i32, i32) {
    %c0_i32 = arith.constant 0 : i32
    %c0_i32_0 = arith.constant 0 : i32
    %c0_i32_1 = arith.constant 0 : i32
    return %arg0, %c0_i32, %c0_i32_0 : i32, i32, i32
  }
  func.func @transform_11(%arg0: i32) -> (i32, i32, i32) {
    %c0_i32 = arith.constant 0 : i32
    %c0_i32_0 = arith.constant 0 : i32
    %c0_i32_1 = arith.constant 0 : i32
    return %arg0, %c0_i32, %c0_i32_0 : i32, i32, i32
  }
  func.func @transform_12(%arg0: i32) -> (i32, i32, i32) {
    %c0_i32 = arith.constant 0 : i32
    %c0_i32_0 = arith.constant 0 : i32
    %c0_i32_1 = arith.constant 0 : i32
    return %arg0, %c0_i32, %c0_i32_0 : i32, i32, i32
  }
  func.func @transform_13(%arg0: i32) -> (i32, i32, i32) {
    %c0_i32 = arith.constant 0 : i32
    %c0_i32_0 = arith.constant 0 : i32
    %c0_i32_1 = arith.constant 0 : i32
    return %arg0, %c0_i32, %c0_i32_0 : i32, i32, i32
  }
  func.func @transform_14(%arg0: i32) -> (i32, i32, i32) {
    %c0_i32 = arith.constant 0 : i32
    %c0_i32_0 = arith.constant 0 : i32
    %c0_i32_1 = arith.constant 0 : i32
    return %arg0, %c0_i32, %c0_i32_0 : i32, i32, i32
  }
  func.func @transform_15(%arg0: i32) -> (i32, i32, i32) {
    %c0_i32 = arith.constant 0 : i32
    %c0_i32_0 = arith.constant 0 : i32
    %c0_i32_1 = arith.constant 0 : i32
    return %arg0, %c0_i32, %c0_i32_0 : i32, i32, i32
  }
  func.func @transform_16(%arg0: i32) -> (i32, i32) {
    %c0_i32 = arith.constant 0 : i32
    %c0_i32_0 = arith.constant 0 : i32
    %c0_i32_1 = arith.constant 0 : i32
    return %c0_i32, %c0_i32_0 : i32, i32
  }
  func.func @transform_17(%arg0: i32) -> (i32, i32) {
    %c0_i32 = arith.constant 0 : i32
    %c0_i32_0 = arith.constant 0 : i32
    %c0_i32_1 = arith.constant 0 : i32
    return %c0_i32, %c0_i32_0 : i32, i32
  }
  func.func @transform_18(%arg0: i32) -> (i32, i32) {
    %c0_i32 = arith.constant 0 : i32
    %c0_i32_0 = arith.constant 0 : i32
    %c0_i32_1 = arith.constant 0 : i32
    return %c0_i32, %c0_i32_0 : i32, i32
  }
}

</mosaic_0001>

<bundles_post_ra>
// kernel: tpu_custom_call.1
= control target key start
LH: loop header
LB: loop body
LE: loop exit
PB: predicated region body
PF: predicated region fallthrough
CT: control target
= control target key end

     0   :  { %s3116_s0 = inlined_call_operand.hbm [shape: f32[16,32], index: 0, kind: input, shape index: {}]   ;;  %s3117_s1 = inlined_call_operand.hbm [shape: f32[16,32], index: 1, kind: input, shape index: {}]   ;;  %s3118_s2 = inlined_call_operand.vmem [shape: bf16[2,32,64], index: 2, kind: input, shape index: {}]   ;;  %s3119_s3 = inlined_call_operand.hbm [shape: f32[2,1,64], index: 3, kind: input, shape index: {}]   ;;  %s3120_s4 = inlined_call_operand.vmem [shape: bf16[2,32,32], index: 4, kind: input, shape index: {}]   ;;  %s3121_s5 = inlined_call_operand.vmem [shape: f32[2,1,32], index: 5, kind: input, shape index: {}]   ;;  %s3122_s6 = inlined_call_operand.vmem [shape: bf16[2,32,32], index: 6, kind: input, shape index: {}]   ;;  %s3123_s7 = inlined_call_operand.vmem [shape: f32[2,1,32], index: 7, kind: input, shape index: {}]   ;;  %s3124_s8 = inlined_call_operand.vmem [shape: f32[2,1,32], index: 8, kind: input, shape index: {}]   ;;  %s3125_s9 = inlined_call_operand.hbm [shape: f32[2,1,32], index: 9, kind: input, shape index: {}]   ;;  %s3126_s10 = inlined_call_operand.hbm [shape: bf16[2,32,64], index: 10, kind: input, shape index: {}]   ;;  %s3127_s11 = inlined_call_operand.vmem [shape: f32[2,1,64], index: 11, kind: input, shape index: {}]   ;;  %s3128_s12 = inlined_call_operand.vmem [shape: bf16[2,64,32], index: 12, kind: input, shape index: {}]   ;;  %s3129_s13 = inlined_call_operand.vmem [shape: f32[2,1,32], index: 13, kind: input, shape index: {}]   ;;  %s3130_s14 = inlined_call_operand.vmem [shape: f32[2,1,32], index: 14, kind: input, shape index: {}]   ;;  %s3131_s15 = inlined_call_operand.hbm [shape: f32[2,1,32], index: 15, kind: input, shape index: {}]   ;;  %s3132_s16 = inlined_call_operand.vmem [shape: f32[1,32], index: 16, kind: input, shape index: {}]   ;;  %s3133_s17 = inlined_call_operand.vmem [shape: f32[1,32], index: 17, kind: input, shape index: {}]   ;;  %s3134_s18 = inlined_call_operand.hbm [shape: f32[16,32], index: 18, kind: output, shape index: {}]  }
   0x1   :  { %3140 = sst [smem:[#allocation20_spill]] %s3116_s0 }
   0x2   :  { %3141 = sst [smem:[#allocation21_spill]] %s3117_s1 }
   0x3   :  { %3142 = sst [smem:[#allocation22_spill]] %s3118_s2 }
   0x4   :  { %3143 = sst [smem:[#allocation23_spill]] %s3119_s3 }
   0x5   :  { %3144 = sst [smem:[#allocation24_spill]] %s3120_s4 }
   0x6   :  { %3145 = sst [smem:[#allocation25_spill]] %s3122_s6 }
   0x7   :  { %3146 = sst [smem:[#allocation26_spill]] %s3125_s9 }
   0x8   :  { %3147 = sst [smem:[#allocation27_spill]] %s3126_s10 }
   0x9   :  { %3148 = sst [smem:[#allocation28_spill]] %s3127_s11 }
   0xa   :  { %3149 = sst [smem:[#allocation29_spill]] %s3128_s12 }
   0xb   :  { %3150 = sst [smem:[#allocation30_spill]] %s3129_s13 }
   0xc   :  { %3151 = sst [smem:[#allocation31_spill]] %s3130_s14 }
   0xd   :  { %3152 = sst [smem:[#allocation32_spill]] %s3131_s15 }
   0xe   :  { %3153 = sst [smem:[#allocation33_spill]] %s3132_s16 }
   0xf   :  { %3154 = sst [smem:[#allocation34_spill]] %s3133_s17 }
  0x10   :  { %3155 = sst [smem:[#allocation35_spill]] %s3134_s18 }
  0x11   :  { %23 = vsyncpa [#allocation4], 0 }
  0x12   :  { %24 = vsyncpa [#allocation7], 0 }
  0x13   :  { %25 = vsyncpa [#allocation5], 0  ;;  %s2660_s27 = smov 0   ;;  %s2662_s28 = smov 0  }
  0x14   :  { %s2664_s29 = smov 0   ;;  %s2666_s30 = smov 0  }
  0x15 LB: > { %3156 = sst [smem:[#allocation17_spill]] %s2540_s29  ;;  %s2679_s0 = sadd.s32 4294967295, %s2544_s30   ;;  %s2544_s30 = sphi %s2666_s30, %s3189_s30   ;;  %s2540_s29 = sphi %s2664_s29, %s3191_s29   ;;  %s2536_s28 = sphi %s2662_s28, %s3193_s28   ;;  %s2532_s27 = sphi %s2660_s27, %s3192_s27  }
  0x16   : > { %p119_p0 = scmp.ne.s32.totalorder %s2536_s28, %s2532_s27  ;;  %p120_p1 = scmp.eq.s32.totalorder %s2679_s0, 0 }
  0x17   : > { %p2009_p2 = scmp.ge.s32.totalorder %s2544_s30, 1  ;;  %p505_p3 = scmp.lt.s32.totalorder %s2544_s30, 3 }
  0x18   : > { %p2688_p5 = por %p120_p1, %p119_p0  ;;  %s3158_s21 = sld [smem:[#allocation20_spill]] }
  0x19   : > { %p2695_p6 = pnand %p2009_p2, %p505_p3  ;;  %s2546_s23 = smov [#allocation3]  }
  0x1a   : > { %s518_s24 = sshll.u32 %s2546_s23, 4  ;;  %s2708_s26 = sadd.s32 1, %s2544_s30   ;;  %s519_s24 = int_to_ptr.vmem [resolvable:$true] %s518_s24 }
  0x1b   : > { %p2140_p7 = pneg %p2695_p6  ;;  %3161 = sst [smem:[#allocation18_spill]] %s2708_s26 }
  0x1c   : > { %s3135_s27 = smov 128   ;;  %s3136_s1 = smov 8  }
  0x1d   : > { %p2703_p8 = pnand %p2140_p7, %p120_p1  ;;  %s103_s20 = ssub.s32 %s2544_s30, %s2708_s26 }
  0x1e   : > { %s516_s22 = sshll.u32 %s3158_s21, 4  ;;  %s106_s21 = sadd.s32 1, %s2540_s29  ;;  %s517_s22 = int_to_ptr.hbm [resolvable:$true] %s516_s22 }
  0x1f   : > { %2143 = dma.hbm_to_vmem [thread:$0]  (!%p2703_p8), %s517_s22, 256, %s519_s24, [#allocation4], %s3135_s27, %s3135_s27, %s3136_s1  }
  0x20   : > { %p104_p9 = scmp.eq.s32.totalorder %s103_s20, 0  ;;  %p113_p10 = scmp.ne.s32.totalorder %s2540_s29, %s2536_s28 }
  0x21   : > { %p114_p11 = scmp.eq.s32.totalorder %s2544_s30, 0  ;;  %p2162_p12 = scmp.lt.s32.totalorder %s2544_s30, 2 }
  0x22   : > { %s2723_s23 = scalar_select %p104_p9, %s2540_s29, %s106_s21  }
  0x23   : > { %p115_p13 = por %p114_p11, %p113_p10  ;;  %s560_s18 = sand.u32 1, %s2544_s30  }
  0x24   : > { %3162 = sst [smem:[#allocation19_spill]] %s2723_s23  ;;  %s2727_s17 = sand.u32 1, %s2540_s29  }
  0x25   : > { %s3163_s3 = sld [smem:[#allocation23_spill]]  ;;  %s563_s24 = scalar_lea.vmem [#allocation8], %s2727_s17 }
  0x26   : > { %s570_s27 = sshll.u32 %s563_s24, 4  ;;  %p2734_p0 = pnand %p2162_p12, %p115_p13  ;;  %s571_s27 = int_to_ptr.vmem [resolvable:$true] %s570_s27 }
  0x27   : > { %s3165_s9 = sld [smem:[#allocation26_spill]]  ;;  %s614_s29 = scalar_lea.vmem [#allocation9], %s2727_s17 }
  0x28   : > { %s2743_s14 = sshll.u32 %s614_s29, 4  ;;  %p2324_p3 = pneg %p2734_p0  ;;  %s622_s14 = int_to_ptr.vmem [resolvable:$true] %s2743_s14 }
  0x2b   : > { %s566_s12 = scalar_lea.hbm %s3163_s3, %s2544_s30  ;;  %s2327_s13 = scalar_lea.hbm %s3163_s3, 2 }
  0x2c   : > { %s568_s22 = sshll.u32 %s566_s12, 4  ;;  %s2747_s12 = scalar_lea.sflag [#allocation4], %s560_s18  ;;  %s569_s22 = int_to_ptr.hbm [resolvable:$true] %s568_s22 }
  0x2d   : > { %s617_s23 = scalar_lea.hbm %s3165_s9, %s2544_s30  ;;  %s2320_s24 = sshra.s32 %s569_s22, 4  ;;  %s2321_s24 = int_to_ptr.hbm [resolvable:$true] %s2320_s24 }
  0x2e   : > { %s2745_s16 = sshll.u32 %s617_s23, 4  ;;  %s2322_s26 = scalar_lea.hbm %s2321_s24, 1  ;;  %s620_s16 = int_to_ptr.hbm [resolvable:$true] %s2745_s16 }
  0x2f   : > { %p2323_p2 = scmp.ne.s32.totalorder %s2321_s24, %s2322_s26  ;;  %p2328_p10 = scmp.lt.s32.totalorder %s2321_s24, %s3163_s3 }
  0x30   : > { %p2329_p11 = scmp.lt.s32.totalorder %s2327_s13, %s2322_s26 }
  0x31   : > { %p2325_p7 = pnand %p2324_p3, %p2323_p2 }
  0x32   : > { %p2330_p12 = por %p2329_p11, %p2328_p10 }
  0x33   : > { %p2326_p9 = pneg %p2325_p7 }
  0x35   : > { %p2331_p13 = pnand %p2330_p12, %p2326_p9 }
  0x37   : > { %2334 = shalt.err (!%p2331_p13)
}
  0x38   : > { %2150 = dma.hbm_to_vmem [thread:$0]  (!%p2734_p0), %s569_s22, 16, %s571_s27, %s2747_s12  }
  0x39   : > { %s2350_s18 = sshra.s32 %s620_s16, 4  ;;  %s2357_s26 = scalar_lea.hbm %s3165_s9, 2  ;;  %s2351_s18 = int_to_ptr.hbm [resolvable:$true] %s2350_s18 }
  0x3a   : > { %s2352_s23 = scalar_lea.hbm %s2351_s18, 1  ;;  %p2358_p9 = scmp.lt.s32.totalorder %s2351_s18, %s3165_s9 }
  0x3b   : > { %p2353_p2 = scmp.ne.s32.totalorder %s2351_s18, %s2352_s23  ;;  %p2359_p10 = scmp.lt.s32.totalorder %s2357_s26, %s2352_s23 }
  0x3d   : > { %p2355_p7 = pnand %p2353_p2, %p2324_p3  ;;  %p2360_p11 = por %p2359_p10, %p2358_p9 }
  0x3f   : > { %p2356_p4 = pneg %p2355_p7 }
  0x41   : > { %p2361_p12 = pnand %p2360_p11, %p2356_p4 }
  0x43   : > { %2364 = shalt.err (!%p2361_p12)
}
  0x44   : > { %2153 = dma.hbm_to_vmem [thread:$0]  (!%p2734_p0), %s620_s16, 16, %s622_s14, %s2747_s12  }
  0x45   : > { %s2013_s27 = sshll.u32 %s2727_s17, 4  ;;  %s2103_s22 = sshll.u32 %s2544_s30, 4 }
  0x46   : > { %s3166_s10 = sld [smem:[#allocation27_spill]]  ;;  %s632_s24 = scalar_lea.vmem [#allocation10], %s2013_s27 }
  0x47   : > { %s640_s18 = sshll.u32 %s632_s24, 4  ;;  %s641_s18 = int_to_ptr.vmem [resolvable:$true] %s640_s18 }
  0x4c   : > { %s637_s11 = scalar_lea.hbm %s3166_s10, %s2103_s22  ;;  %s2387_s1 = scalar_lea.hbm %s3166_s10, 32 }
  0x4d   : > { %s638_s13 = sshll.u32 %s637_s11, 4  ;;  %s639_s13 = int_to_ptr.hbm [resolvable:$true] %s638_s13 }
  0x4e   : > { %s2380_s23 = sshra.s32 %s639_s13, 4  ;;  %s2381_s23 = int_to_ptr.hbm [resolvable:$true] %s2380_s23 }
  0x4f   : > { %s2382_s26 = scalar_lea.hbm %s2381_s23, 16  ;;  %p2388_p7 = scmp.lt.s32.totalorder %s2381_s23, %s3166_s10 }
  0x50   : > { %p2383_p4 = scmp.ne.s32.totalorder %s2381_s23, %s2382_s26  ;;  %p2389_p9 = scmp.lt.s32.totalorder %s2387_s1, %s2382_s26 }
  0x52   : > { %p2385_p13 = pnand %p2383_p4, %p2324_p3  ;;  %p2390_p10 = por %p2389_p9, %p2388_p7 }
  0x54   : > { %p2386_p2 = pneg %p2385_p13 }
  0x56   : > { %p2391_p11 = pnand %p2390_p10, %p2386_p2 }
  0x58   : > { %2394 = shalt.err (!%p2391_p11)
}
  0x59   : > { %s2549_s27 = smov 64   ;;  %s2550_s22 = smov 4  }
  0x5a   : > { %2156 = dma.hbm_to_vmem [thread:$0]  (!%p2734_p0), %s639_s13, 256, %s641_s18, %s2747_s12, %s2549_s27, %s2549_s27, %s2550_s22  }
  0x5b   : > { %s3167_s24 = sld [smem:[#allocation21_spill]]  ;;  %s2551_s3 = smov [#allocation6]  }
  0x5c   : > { %s532_s23 = sshll.u32 %s2551_s3, 4  ;;  %s3168_s26 = smov 8   ;;  %s533_s23 = int_to_ptr.vmem [resolvable:$true] %s532_s23 }
  0x5d   : > { %s3169_s16 = smov 128   ;;  %s3170_s15 = sld [smem:[#allocation32_spill]] }
  0x5e   : > { %s679_s10 = scalar_lea.vmem [#allocation11], %s2727_s17 }
  0x5f   : > { %s686_s13 = sshll.u32 %s679_s10, 4  ;;  %s687_s13 = int_to_ptr.vmem [resolvable:$true] %s686_s13 }
  0x61   : > { %s530_s14 = sshll.u32 %s3167_s24, 4  ;;  %s531_s14 = int_to_ptr.hbm [resolvable:$true] %s530_s14 }
  0x62   : > { %2146 = dma.hbm_to_vmem [thread:$0]  (!%p2703_p8), %s531_s14, 256, %s533_s23, [#allocation7], %s3169_s16, %s3169_s16, %s3168_s26  }
  0x63   : > { %s682_s9 = scalar_lea.hbm %s3170_s15, %s2544_s30  ;;  %s2447_s11 = scalar_lea.hbm %s3170_s15, 2 }
  0x64   : > { %s684_s18 = sshll.u32 %s682_s9, 4  ;;  %s685_s18 = int_to_ptr.hbm [resolvable:$true] %s684_s18 }
  0x65   : > { %s2440_s27 = sshra.s32 %s685_s18, 4  ;;  %s2441_s27 = int_to_ptr.hbm [resolvable:$true] %s2440_s27 }
  0x66   : > { %s2442_s22 = scalar_lea.hbm %s2441_s27, 1  ;;  %p2448_p8 = scmp.lt.s32.totalorder %s2441_s27, %s3170_s15 }
  0x67   : > { %p2443_p12 = scmp.ne.s32.totalorder %s2441_s27, %s2442_s22  ;;  %p2449_p2 = scmp.lt.s32.totalorder %s2447_s11, %s2442_s22 }
  0x69   : > { %p2445_p4 = pnand %p2443_p12, %p2324_p3  ;;  %p2450_p7 = por %p2449_p2, %p2448_p8 }
  0x6b   : > { %p2446_p13 = pneg %p2445_p4 }
  0x6d   : > { %p2451_p9 = pnand %p2450_p7, %p2446_p13 }
  0x6f   : > { %2454 = shalt.err (!%p2451_p9)
}
  0x70   : > { %2159 = dma.hbm_to_vmem [thread:$0]  (!%p2734_p0), %s685_s18, 16, %s687_s13, %s2747_s12  }
  0x71   : > { %695 = sbr.rel (%p2695_p6) target bundleno = 2816 (0xb00), region = 92 }
  0x76   : > { %2515 = dma.done.wait (%p120_p1), [#allocation4], 256  }
  0x77   : > { %2517 = vsyncadd (%p120_p1), [#allocation4], 4294967040 }
  0x78   : > { %2519 = dma.done.wait (%p120_p1), [#allocation7], 256  }
  0x79   : > { %2521 = vsyncadd (%p120_p1), [#allocation7], 4294967040  ;;  %s707_s9 = sand.u32 1, %s2679_s0   ;;  %s2831_s10 = sand.u32 1, %s2536_s28  }
  0x7a   : > { %s708_s17 = scalar_lea.sflag [#allocation4], %s707_s9 }
  0x7b   : > { %2523 = dma.done.wait (%p2688_p5), %s708_s17, 304  }
  0x7c   : > { %2525 = vsyncadd (%p2688_p5), %s708_s17, 4294966992  ;;  %s2019_s2 = sshll.u32 %s2831_s10, 4  ;;  %p837_p1 = scmp.lt.s32.totalorder %s2679_s0, 1 }
  0x7d   : > { %s3171_s1 = sld [smem:[#allocation22_spill]]  ;;  %s719_s9 = scalar_lea.vmem [#allocation9], %s2831_s10 }
  0x7e   : > { %s2841_s20 = scalar_select %p837_p1, %s2679_s0, 1 }
  0x7f   : > { %s3172_s4 = sld [smem:[#allocation24_spill]]  ;;  %s2888_s17 = scalar_lea.vmem [#allocation10], %s2019_s2 }
  0x80   : > { %s2104_s12 = sshll.u32 %s2841_s20, 4  ;;  %s3173_s6 = sld [smem:[#allocation25_spill]] }
  0x81   : > { %s3174_s16 = sld [smem:[#allocation28_spill]]  ;;  %s2107_s13 = sshll.u32 %s2841_s20, 5 }
  0x82   : > { %s3175_s30 = sld [smem:[#allocation30_spill]]  ;;  %s738_s19 = scalar_lea.vmem [#allocation11], %s2831_s10 }
  0x83   : > { %s841_s21 = scalar_lea.vmem %s3171_s1, %s2104_s12  ;;  %s3176_s25 = sld [smem:[#allocation29_spill]] }
  0x84   : > { %s3177_s14 = sld [smem:[#allocation31_spill]]  ;;  %p3178_p5 = scmp.ne.s32.totalorder %s2679_s0, 0 }
  0x85   : > { %s2854_s27 = scalar_lea.vmem %s3172_s4, %s2104_s12 }
  0x86   : > { %s2859_s29 = scalar_lea.vmem %s3173_s6, %s2104_s12  ;;  %879 = sbr.rel (%p3178_p5) target bundleno = 142 (0x8e), region = 120 }
  0x87   : > { %s863_s1 = scalar_lea.vmem %s3174_s16, %s2841_s20 }
  0x88   : > { %s871_s4 = scalar_lea.vmem %s3175_s30, %s2841_s20 }
  0x89   : > { %s2881_s6 = scalar_lea.vmem %s3176_s25, %s2107_s13 }
  0x8a   : > { %s874_s15 = scalar_lea.vmem %s3177_s14, %s2841_s20 }
  0x8b   : > { %v880_v0 = vld [vmem:[#allocation3] sm:$0xff]  ;;  %vm882_vm0 = vcmask 261120   ;;  %v881_v1 = vld [vmem:[#allocation3 + $0x8] sm:$0xff] }
  0x8c   : > { %883 = vst.msk [vmem:[#allocation2] sm:$0xff] %vm882_vm0, %v880_v0 }
  0x8d   : > { %884 = vst.msk [vmem:[#allocation2 + $0x8] sm:$0xff] %vm882_vm0, %v881_v1 }
  0x8e PF: > { %v2109_v2 = vld [vmem:[%s841_s21 + $0x8] sm:$0xff]  ;;  %v887_v5 = vld [vmem:[#allocation6] sm:$0xff]  ;;  %vm913_vm1 = vcmask 261120   ;;  %s3179_s30 = scalar_lea.vmem [#allocation8], %s2831_s10  ;;  %s2552_s2 = smov 120   ;;  %vm977_vm2 = vcmask 64512  }
  0x8f   : > { %v888_v6 = vld [vmem:[#allocation6 + $0x8] sm:$0xff]  ;;  %923 = vmatpush.bf16.msra.mxu0 %v2109_v2  ;;  %v2108_v7 = vld [vmem:[%s841_s21] sm:$0xff]  ;;  %s2553_s23 = smov 96   ;;  %s2554_s21 = smov 80   ;;  %vm1012_vm3 = vcmask 1043456   ;;  %vm1213_vm4 = vcmask 130048  }
  0x90   : > { %v2233_v11 = vld [vmem:[%s3179_s30] ss:$0 sm:$0xff]  ;;  %s2555_s14 = smov 72   ;;  %s2556_s3 = smov 112   ;;  %v2111_v22 = vld [vmem:[%s2854_s27 + $0x8] sm:$0xff]  ;;  %vm1215_vm5 = vcmask 195584  }
  0x91   : > { %s2557_s26 = smov 104   ;;  %s2558_s16 = smov 88   ;;  %960 = vmatpush.bf16.msra.mxu1 %v2111_v22  ;;  %v2110_v23 = vld [vmem:[%s2854_s27] sm:$0xff]  ;;  %vm1638_vm13 = vcmask 523264  }
  0x92   : > { %s3180_s18 = scalar_lea.vmem %s3121_s5, %s2841_s20  ;;  %s2559_s22 = smov 8  }
  0x93   : > { %v2893_v3 = vld [vmem:[#allocation2] sm:$0xff]  ;;  %924 = vmatpush.bf16.msra.mxu0 %v2108_v7  ;;  %s2560_s12 = smov 24   ;;  %s2561_s25 = smov 16  }
  0x94   : > { %v2895_v4 = vld [vmem:[#allocation2 + $0x8] sm:$0xff]  ;;  %v889_v8 = vadd.f32 %v887_v5, %v2893_v3  ;;  %v2234_v33 = vld [vmem:[%s3180_s18] ss:$0 sm:$0xff]  ;;  %s3181_s24 = scalar_lea.vmem %s3123_s7, %s2841_s20  ;;  %p2098_p6 = scmp.ne.s32.totalorder %s2679_s0, 1 }
  0x95   : > { %v890_v9 = vadd.f32 %v888_v6, %v2895_v4  ;;  %961 = vmatpush.bf16.msra.mxu1 %v2110_v23  ;;  %v892_v24 = vpack.c.bf16 %v2895_v4, %v2893_v3  ;;  %s3187_s27 = sld [smem:[#allocation34_spill]] (!%p2098_p6) }
  0x97   : > { %v891_v10 = vpack.c.bf16 %v890_v9, %v889_v8 }
  0x98   : > { %2046 = vmatmul.msk.bf16.vlgmr.msra.gmra.mxu1 %vm913_vm1, %v892_v24 }
  0x99   : > { %2037 = vmatmul.msk.bf16.vlgmr.msra.gmra.mxu0 %vm913_vm1, %v891_v10 }
 0x115   : > { %v963_v32 = vpop.f32.mrf.mxu1 }
 0x116   : > { %v926_v12 = vpop.f32.mrf.mxu0  ;;  %v964_v56 = vadd.f32 %v2234_v33, %v963_v32 }
 0x117   : > { %v927_v13 = vadd.f32 %v2233_v11, %v926_v12 }
 0x118   : > { %v970_v57 = vpack.c.bf16 %v964_v56, %v964_v56 }
 0x119   : > { %v968_v14 = vpack.c.bf16 %v927_v13, %v927_v13 }
 0x11a   : > { %v1014_v58 = vsel %vm1012_vm3, %v970_v57, 0 }
 0x11b   : > { %v973_v15 = vunpack.c.l.b16 %v968_v14  ;;  %1023 = vmatpush.bf16.msra.mxu3 %v1014_v58 }
 0x11d   : > { %v2902_v16 = vpack.c.b16 %v973_v15, %v973_v15  ;;  %v965_v34 = vpop.f32.mrf.mxu1 }
 0x11e   : > { %v928_v17 = vpop.f32.mrf.mxu0  ;;  %v2936_v35 = vadd.f32 %v2234_v33, %v965_v34 }
 0x11f   : > { %1029 = vrot.lane.b32.xlu2 %v2902_v16, %s2552_s2  ;;  %975 = vrot.lane.b32.xlu0 %v2902_v16, %s2553_s23  ;;  %v929_v18 = vadd.f32 %v2233_v11, %v928_v17 }
 0x121   : > { %v2913_v19 = vpack.c.bf16 %v929_v18, %v929_v18 }
 0x123   : > { %v1218_v20 = vunpack.c.l.b16 %v2913_v19 }
 0x125   : > { %v1219_v21 = vpack.c.b16 %v1218_v20, %v1218_v20 }
 0x127   : > { %1090 = vrot.lane.b32.xlu2 %v2902_v16, %s2554_s21 }
 0x12f   : > { %1146 = vrot.lane.b32.xlu2 %v2902_v16, %s2555_s14 }
 0x137   : > { %1088 = vrot.lane.b32.xlu2 %v2902_v16, %s2556_s3 }
 0x13f   : > { %1144 = vrot.lane.b32.xlu2 %v2902_v16, %s2557_s26 }
 0x147   : > { %1274 = vrot.lane.b32.xlu2 %v1219_v21, %s2558_s16 }
 0x14f   : > { %1333 = vrot.lane.b32.xlu2 %v1219_v21, %s2554_s21 }
 0x157   : > { %1387 = vrot.lane.b32.xlu2 %v1219_v21, %s2557_s26 }
 0x179   : > { %v2925_v25 = vpop.permute.xlu2 %1029 }
 0x181   : > { %v1091_v26 = vpop.permute.xlu2 %1090 }
 0x182   : > { %v1096_v27 = vsel %vm977_vm2, %v1091_v26, 0 }
 0x183   : > { %1105 = vmatpush.bf16.xpose.msrb.mxu1 %v1096_v27 }
 0x189   : > { %v1147_v28 = vpop.permute.xlu2 %1146 }
 0x18a   : > { %v1152_v1 = vsel %vm977_vm2, %v1147_v28, 0 }
 0x191   : > { %v1089_v29 = vpop.permute.xlu2 %1088  ;;  %v976_v30 = vpop.permute.xlu0 %975 }
 0x192   : > { %2051 = vmatmul.msk.bf16.vlgmr.msrb.gmra.mxu1 %vm977_vm2, %v1089_v29  ;;  %v982_v31 = vsel %vm977_vm2, %v976_v30, 0  ;;  %v1065_v29 = vunpack.c.l.b16 %v970_v57 }
 0x193   : > { %991 = vmatpush.bf16.xpose.msra.mxu2 %v982_v31 }
 0x194   : > { %v1066_v32 = vpack.c.b16 %v1065_v29, %v1065_v29 }
 0x199   : > { %v1145_v42 = vpop.permute.xlu2 %1144 }
 0x19a   : > { %2047 = vmatmul.msk.bf16.vlgmr.msra.gmra.mxu2 %vm977_vm2, %v968_v14 }
 0x1a1   : > { %v1275_v43 = vpop.permute.xlu2 %1274 }
 0x1a2   : > { %v1280_v5 = vsel %vm977_vm2, %v1275_v43, 0 }
 0x1a9   : > { %v1334_v44 = vpop.permute.xlu2 %1333 }
 0x1aa   : > { %v1339_v7 = vsel %vm977_vm2, %v1334_v44, 0 }
 0x1b1   : > { %v1388_v45 = vpop.permute.xlu2 %1387 }
 0x20f   : > { %v1107_v36 = vpop.f32.mrf.mxu1 }
 0x210   : > { %v1111_v37 = vsel %vm977_vm2, %v1107_v36, -inf }
 0x211   : > { %1112 = vmax.xlane.f32.xlu2 %v1111_v37 }
 0x217   : > { %v1109_v38 = vpop.f32.mrf.mxu1 }
 0x21d   : > { %v993_v39 = vpop.f32.mrf.mxu2 }
 0x21e   : > { %v997_v40 = vsel %vm977_vm2, %v993_v39, -inf }
 0x21f   : > { %998 = vmax.xlane.f32.xlu0 %v997_v40 }
 0x225   : > { %v995_v41 = vpop.f32.mrf.mxu2 }
 0x233   : > { %1331 = vrot.lane.b32.xlu0 %v1219_v21, %s2556_s3 }
 0x284   : > { %v1113_v46 = vpop.xlane.xlu2 %1112 }
 0x285   : > { %v1114_v47 = vsub.f32 %v1107_v36, %v1113_v46 }
 0x287   : > { %v1115_v48 = vmul.f32 1.442695, %v1114_v47 }
 0x289   : > { %2242 = vpow2.f32 %v1115_v48 }
 0x28f   : > { %v2941_v49 = vpop.eup %2242 }
 0x290   : > { %v1117_v50 = vsel %vm977_vm2, %v2941_v49, 0.0 }
 0x291   : > { %1118 = vadd.xlane.f32.xlu0 %v1117_v50 }
 0x292   : > { %v999_v51 = vpop.xlane.xlu0 %998 }
 0x293   : > { %v1000_v52 = vsub.f32 %v993_v39, %v999_v51 }
 0x295   : > { %v1001_v53 = vmul.f32 1.442695, %v1000_v52 }
 0x297   : > { %2244 = vpow2.f32 %v1001_v53 }
 0x29d   : > { %v2245_v54 = vpop.eup %2244 }
 0x29e   : > { %v1003_v55 = vsel %vm977_vm2, %v2245_v54, 0.0 }
 0x29f   : > { %1004 = vadd.xlane.f32.xlu1 %v1003_v55 }
 0x2a5   : > { %v1332_v11 = vpop.permute.xlu0 %1331 }
 0x2b8   : > { %1031 = vrot.lane.b32.xlu1 %v2902_v16, %s2558_s16 }
 0x2c0   : > { %1220 = vrot.lane.b32.xlu1 %v1219_v21, %s2553_s23 }
 0x2c8   : > { %1272 = vrot.lane.b32.xlu1 %v1219_v21, %s2552_s2 }
 0x2d0   : > { %1389 = vrot.lane.b32.xlu1 %v1219_v21, %s2555_s14 }
 0x304   : > { %v1119_v40 = vpop.xlane.xlu0 %1118 }
 0x312   : > { %v1005_v59 = vpop.xlane.xlu1 %1004 }
 0x313   : > { %2246 = vrcp.f32 %v1005_v59 }
 0x319   : > { %v2247_v60 = vpop.eup %2246 }
 0x31a   : > { %v1007_v61 = vmul.f32 %v2247_v60, %v2245_v54 }
 0x31c   : > { %v1008_v62 = vpack.c.bf16 %v1007_v61, %v1007_v61 }
 0x31e   : > { %2048 = vmatmul.msk.bf16.vlgmr.msra.gmra.mxu3 %vm977_vm2, %v1008_v62 }
 0x32a   : > { %v1032_v63 = vpop.permute.xlu1 %1031 }
 0x32b   : > { %v1037_v0 = vsel %vm977_vm2, %v1032_v63, 0 }
 0x32c   : > { %1046 = vmatpush.bf16.xpose.msrb.mxu3 %v1037_v0 }
 0x332   : > { %v1221_v2 = vpop.permute.xlu1 %1220 }
 0x333   : > { %v1226_v6 = vsel %vm977_vm2, %v1221_v2, 0  ;;  %2049 = vmatmul.msk.bf16.vlgmr.msrb.gmra.mxu3 %vm977_vm2, %v2925_v25 }
 0x334   : > { %1161 = vmatpush.bf16.xpose.msra.mxu3 %v1152_v1  ;;  %1235 = vmatpush.bf16.xpose.msra.mxu1 %v1226_v6  ;;  %v971_v1 = vpack.c.bf16 %v2936_v35, %v2936_v35 }
 0x33a   : > { %v1273_v8 = vpop.permute.xlu1 %1272 }
 0x33b   : > { %2055 = vmatmul.msk.bf16.vlgmr.msra.gmra.mxu1 %vm977_vm2, %v2913_v19 }
 0x33c   : > { %1289 = vmatpush.bf16.xpose.msrb.mxu3 %v1280_v5  ;;  %1348 = vmatpush.bf16.xpose.msrb.mxu1 %v1339_v7  ;;  %v1308_v5 = vunpack.c.l.b16 %v971_v1 }
 0x342   : > { %v1390_v9 = vpop.permute.xlu1 %1389 }
 0x343   : > { %v1395_v10 = vsel %vm977_vm2, %v1390_v9, 0  ;;  %2053 = vmatmul.msk.bf16.vlgmr.msra.gmra.mxu3 %vm977_vm2, %v1145_v42 }
 0x344   : > { %1404 = vmatpush.bf16.xpose.msra.mxu3 %v1395_v10 }
 0x34b   : > { %2059 = vmatmul.msk.bf16.vlgmr.msrb.gmra.mxu1 %vm977_vm2, %v1332_v11 }
 0x353   : > { %2057 = vmatmul.msk.bf16.vlgmr.msrb.gmra.mxu3 %vm977_vm2, %v1273_v8  ;;  %v1309_v8 = vpack.c.b16 %v1308_v5, %v1308_v5  ;;  %v2112_v5 = vld [vmem:[%s2859_s29] sm:$0xff] }
 0x363   : > { %2061 = vmatmul.msk.bf16.vlgmr.msra.gmra.mxu3 %vm977_vm2, %v1388_v45 }
 0x3a1   : > { %v2967_v12 = vpop.f32.mrf.mxu3 }
 0x3a9   : > { %v1027_v13 = vpop.f32.mrf.mxu3 }
 0x3aa   : > { %v1257_v13 = vsel %vm1012_vm3, %v971_v1, 0 }
 0x3b6   : > { %v1048_v14 = vpop.f32.mrf.mxu3 }
 0x3b7   : > { %v1052_v25 = vsel %vm977_vm2, %v1048_v14, -inf }
 0x3b8   : > { %v1237_v15 = vpop.f32.mrf.mxu1 }
 0x3b9   : > { %v1241_v16 = vsel %vm977_vm2, %v1237_v15, -inf }
 0x3ba   : > { %1242 = vmax.xlane.f32.xlu1 %v1241_v16 }
 0x3be   : > { %v1050_v17 = vpop.f32.mrf.mxu3 }
 0x3c0   : > { %v1239_v18 = vpop.f32.mrf.mxu1 }
 0x3c6   : > { %v1163_v19 = vpop.f32.mrf.mxu3 }
 0x3c7   : > { %v1167_v20 = vsel %vm977_vm2, %v1163_v19, -inf }
 0x3c8   : > { %1168 = vmax.xlane.f32.xlu0 %v1167_v20  ;;  %v2971_v21 = vpop.f32.mrf.mxu1 }
 0x3c9   : > { %v1354_v22 = vsel %vm977_vm2, %v2971_v21, -inf }
 0x3ca   : > { %1355 = vmax.xlane.f32.xlu1 %v1354_v22 }
 0x3ce   : > { %v1165_v23 = vpop.f32.mrf.mxu3 }
 0x3d0   : > { %v1352_v24 = vpop.f32.mrf.mxu1 }
 0x3d2   : > { %1053 = vmax.xlane.f32.xlu1 %v1052_v25 }
 0x3d6   : > { %v1291_v26 = vpop.f32.mrf.mxu3 }
 0x3d7   : > { %v1295_v27 = vsel %vm977_vm2, %v1291_v26, -inf }
 0x3d8   : > { %1296 = vmax.xlane.f32.xlu2 %v1295_v27 }
 0x3de   : > { %v1293_v28 = vpop.f32.mrf.mxu3 }
 0x3e6   : > { %v1406_v30 = vpop.f32.mrf.mxu3 }
 0x3e7   : > { %v1410_v31 = vsel %vm977_vm2, %v1406_v30, -inf }
 0x3e8   : > { %1411 = vmax.xlane.f32.xlu0 %v1410_v31 }
 0x3eb   : > { %1067 = vrot.lane.b32.xlu1 %v1066_v32, %s2552_s2 }
 0x3ee   : > { %v1408_v33 = vpop.f32.mrf.mxu3 }
 0x3f0   : > { %1179 = vrot.lane.b32.xlu2 %v1066_v32, %s2557_s26 }
 0x3fc   : > { %1123 = vrot.lane.b32.xlu0 %v1066_v32, %s2556_s3 }
 0x42d   : > { %v1243_v34 = vpop.xlane.xlu1 %1242 }
 0x42e   : > { %v1244_v36 = vsub.f32 %v1237_v15, %v1243_v34 }
 0x430   : > { %v1245_v37 = vmul.f32 1.442695, %v1244_v36 }
 0x432   : > { %2248 = vpow2.f32 %v1245_v37 }
 0x438   : > { %v2981_v38 = vpop.eup %2248 }
 0x439   : > { %v1247_v39 = vsel %vm977_vm2, %v2981_v38, 0.0 }
 0x43a   : > { %1248 = vadd.xlane.f32.xlu1 %v1247_v39 }
 0x43b   : > { %v1169_v42 = vpop.xlane.xlu0 %1168 }
 0x43c   : > { %v1170_v45 = vsub.f32 %v1163_v19, %v1169_v42 }
 0x43d   : > { %v1356_v41 = vpop.xlane.xlu1 %1355 }
 0x43e   : > { %v1171_v47 = vmul.f32 1.442695, %v1170_v45 }
 0x445   : > { %v1054_v43 = vpop.xlane.xlu1 %1053 }
 0x446   : > { %v1055_v44 = vsub.f32 %v1048_v14, %v1054_v43  ;;  %v1357_v14 = vsub.f32 %v2971_v21, %v1356_v41 }
 0x448   : > { %v1056_v46 = vmul.f32 1.442695, %v1055_v44  ;;  %v1358_v15 = vmul.f32 1.442695, %v1357_v14 }
 0x44a   : > { %2250 = vpow2.f32 %v1056_v46 }
 0x44b   : > { %v1297_v48 = vpop.xlane.xlu2 %1296  ;;  %2252 = vpow2.f32 %v1171_v47 }
 0x44c   : > { %v1298_v50 = vsub.f32 %v1291_v26, %v1297_v48 }
 0x44e   : > { %v1299_v51 = vmul.f32 1.442695, %v1298_v50 }
 0x450   : > { %v2251_v52 = vpop.eup %2250  ;;  %2254 = vpow2.f32 %v1299_v51 }
 0x451   : > { %v1058_v53 = vsel %vm977_vm2, %v2251_v52, 0.0  ;;  %v2253_v54 = vpop.eup %2252 }
 0x452   : > { %1059 = vadd.xlane.f32.xlu2 %v1058_v53  ;;  %v1173_v57 = vsel %vm977_vm2, %v2253_v54, 0.0 }
 0x453   : > { %v1180_v59 = vpop.permute.xlu2 %1179 }
 0x454   : > { %v1185_v0 = vsel %vm1012_vm3, %v1180_v59, 0 }
 0x456   : > { %v2986_v55 = vpop.eup %2254 }
 0x457   : > { %v1301_v56 = vsel %vm977_vm2, %v2986_v55, 0.0 }
 0x458   : > { %1302 = vadd.xlane.f32.xlu0 %v1301_v56 }
 0x45a   : > { %1174 = vadd.xlane.f32.xlu2 %v1173_v57 }
 0x45b   : > { %v1412_v58 = vpop.xlane.xlu0 %1411 }
 0x45c   : > { %v1413_v60 = vsub.f32 %v1406_v30, %v1412_v58 }
 0x45d   : > { %v1068_v61 = vpop.permute.xlu1 %1067 }
 0x45e   : > { %v1414_v62 = vmul.f32 1.442695, %v1413_v60  ;;  %v1073_v63 = vsel %vm1012_vm3, %v1068_v61, 0 }
 0x45f   : > { %1082 = vmatpush.bf16.msrb.mxu0 %v1073_v63 }
 0x460   : > { %2256 = vpow2.f32 %v1414_v62 }
 0x461   : > { %2258 = vrcp.f32 %v1119_v40 }
 0x462   : > { %2260 = vpow2.f32 %v1358_v15 }
 0x463   : > { %1194 = vmatpush.bf16.msra.mxu0 %v1185_v0 }
 0x466   : > { %v2257_v2 = vpop.eup %2256 }
 0x467   : > { %v1416_v6 = vsel %vm977_vm2, %v2257_v2, 0.0  ;;  %v2259_v7 = vpop.eup %2258 }
 0x468   : > { %1417 = vadd.xlane.f32.xlu1 %v1416_v6  ;;  %v1121_v9 = vmul.f32 %v2259_v7, %v2941_v49  ;;  %v2261_v16 = vpop.eup %2260 }
 0x469   : > { %v1360_v49 = vsel %vm977_vm2, %v2261_v16, 0.0 }
 0x46a   : > { %v1122_v35 = vpack.c.bf16 %v1121_v9, %v1121_v9 }
 0x46c   : > { %1366 = vrot.lane.b32.xlu0 %v1309_v8, %s2556_s3 }
 0x46e   : > { %v1124_v10 = vpop.permute.xlu0 %1123 }
 0x46f   : > { %v1129_v11 = vsel %vm1012_vm3, %v1124_v10, 0 }
 0x470   : > { %1138 = vmatpush.bf16.msrb.mxu2 %v1129_v11 }
 0x472   : > { %1310 = vrot.lane.b32.xlu2 %v1309_v8, %s2552_s2  ;;  %s3182_s2 = scalar_lea.vmem %s3124_s8, %s2841_s20  ;;  %s3186_s20 = sld [smem:[#allocation33_spill]] (!%p2098_p6) }
 0x473   : > { %2052 = vmatmul.msk.bf16.vlgmr.msrb.gmra.mxu2 %vm977_vm2, %v1122_v35 }
 0x474   : > { %1266 = vmatpush.bf16.msra.mxu2 %v1257_v13 }
 0x481   : > { %1422 = vrot.lane.b32.xlu1 %v1309_v8, %s2557_s26 }
 0x49b   : > { %1361 = vadd.xlane.f32.xlu2 %v1360_v49 }
 0x4ad   : > { %v1249_v17 = vpop.xlane.xlu1 %1248 }
 0x4ae   : > { %2262 = vrcp.f32 %v1249_v17 }
 0x4b4   : > { %v2263_v18 = vpop.eup %2262 }
 0x4b5   : > { %v1251_v19 = vmul.f32 %v2263_v18, %v2981_v38 }
 0x4b7   : > { %v1252_v20 = vpack.c.bf16 %v1251_v19, %v1251_v19 }
 0x4b9   : > { %2056 = vmatmul.msk.bf16.vlgmr.msra.gmra.mxu2 %vm977_vm2, %v1252_v20 }
 0x4c5   : > { %v1060_v22 = vpop.xlane.xlu2 %1059 }
 0x4c6   : > { %2264 = vrcp.f32 %v1060_v22  ;;  %v2235_v22 = vld [vmem:[%s3181_s24] ss:$0 sm:$0xff] }
 0x4cb   : > { %v1303_v27 = vpop.xlane.xlu0 %1302 }
 0x4cc   : > { %v2265_v23 = vpop.eup %2264 }
 0x4cd   : > { %v1062_v24 = vmul.f32 %v2265_v23, %v2251_v52  ;;  %v1175_v25 = vpop.xlane.xlu2 %1174 }
 0x4ce   : > { %2266 = vrcp.f32 %v1175_v25 }
 0x4cf   : > { %v1063_v21 = vpack.c.bf16 %v1062_v24, %v1062_v24  ;;  %2268 = vrcp.f32 %v1303_v27 }
 0x4d1   : > { %2050 = vmatmul.msk.bf16.vlgmr.msrb.gmra.mxu0 %vm977_vm2, %v1063_v21 }
 0x4d4   : > { %v2267_v29 = vpop.eup %2266 }
 0x4d5   : > { %v1311_v26 = vpop.permute.xlu2 %1310  ;;  %v1177_v30 = vmul.f32 %v2267_v29, %v2253_v54  ;;  %v2269_v34 = vpop.eup %2268  ;;  %v2562_v29 = vmov 32.0  }
 0x4d6   : > { %v1316_v28 = vsel %vm1012_vm3, %v1311_v26, 0  ;;  %v1305_v36 = vmul.f32 %v2269_v34, %v2986_v55 }
 0x4d7   : > { %1325 = vmatpush.bf16.msrb.mxu0 %v1316_v28  ;;  %v1178_v32 = vpack.c.bf16 %v1177_v30, %v1177_v30 }
 0x4d8   : > { %v1306_v38 = vpack.c.bf16 %v1305_v36, %v1305_v36 }
 0x4db   : > { %v1418_v37 = vpop.xlane.xlu1 %1417 }
 0x4dc   : > { %2270 = vrcp.f32 %v1418_v37 }
 0x4de   : > { %v1367_v31 = vpop.permute.xlu0 %1366 }
 0x4df   : > { %v1372_v33 = vsel %vm1012_vm3, %v1367_v31, 0 }
 0x4e0   : > { %1381 = vmatpush.bf16.msrb.mxu2 %v1372_v33 }
 0x4e1   : > { %2054 = vmatmul.msk.bf16.vlgmr.msra.gmra.mxu0 %vm977_vm2, %v1178_v32 }
 0x4e2   : > { %v2271_v42 = vpop.eup %2270 }
 0x4e3   : > { %v1420_v43 = vmul.f32 %v2271_v42, %v2257_v2  ;;  %v2113_v2 = vld [vmem:[%s2859_s29 + $0x8] sm:$0xff] }
 0x4e4   : > { %1488 = vmatpush.bf16.msra.mxu1 %v2113_v2  ;;  %v2236_v2 = vld [vmem:[%s3182_s2] ss:$0 sm:$0xff] }
 0x4e5   : > { %v1421_v45 = vpack.c.bf16 %v1420_v43, %v1420_v43 }
 0x4e8   : > { %1489 = vmatpush.bf16.msra.mxu1 %v2112_v5 }
 0x4f1   : > { %2058 = vmatmul.msk.bf16.vlgmr.msrb.gmra.mxu0 %vm977_vm2, %v1306_v38 }
 0x4f3   : > { %v1423_v39 = vpop.permute.xlu1 %1422 }
 0x4f4   : > { %v1428_v40 = vsel %vm1012_vm3, %v1423_v39, 0 }
 0x4f5   : > { %1437 = vmatpush.bf16.msra.mxu0 %v1428_v40 }
 0x4f6   : > { %v1140_v41 = vpop.f32.mrf.mxu2 }
 0x4fe   : > { %v1142_v44 = vpop.f32.mrf.mxu2 }
 0x501   : > { %2062 = vmatmul.msk.bf16.vlgmr.msra.gmra.mxu0 %vm977_vm2, %v1421_v45  ;;  %v2115_v45 = vld [vmem:[%s2888_s17 + $0x8] sm:$0xff] }
 0x502   : > { %1591 = vmatpush.bf16.msra.mxu2 %v2115_v45 }
 0x50e   : > { %v1362_v46 = vpop.xlane.xlu2 %1361 }
 0x50f   : > { %2272 = vrcp.f32 %v1362_v46 }
 0x510   : > { %2274 = vrcp.f32 %v2562_v29 }
 0x515   : > { %v2273_v47 = vpop.eup %2272 }
 0x516   : > { %v1364_v48 = vmul.f32 %v2273_v47, %v2261_v16  ;;  %v2275_v30 = vpop.eup %2274 }
 0x517   : > { %v1507_v31 = vmul.f32 32.0, %v2275_v30  ;;  %vm1511_vm6 = vweird.f32 %v2275_v30 }
 0x518   : > { %v1365_v50 = vpack.c.bf16 %v1364_v48, %v1364_v48  ;;  %v2114_v48 = vld [vmem:[%s2888_s17] sm:$0xff] }
 0x519   : > { %v1508_v32 = vsub.f32 1.0, %v1507_v31  ;;  %1592 = vmatpush.bf16.msra.mxu2 %v2114_v48 }
 0x51a   : > { %2060 = vmatmul.msk.bf16.vlgmr.msrb.gmra.mxu2 %vm977_vm2, %v1365_v50 }
 0x51b   : > { %v1509_v33 = vmul.f32 %v2275_v30, %v1508_v32 }
 0x51d   : > { %v1510_v34 = vadd.f32 %v2275_v30, %v1509_v33 }
 0x53c   : > { %v1268_v51 = vpop.f32.mrf.mxu2 }
 0x544   : > { %v1270_v52 = vpop.f32.mrf.mxu2 }
 0x54e   : > { %v1084_v53 = vpop.f32.mrf.mxu0 }
 0x556   : > { %v1086_v54 = vpop.f32.mrf.mxu0 }
 0x55e   : > { %v1196_v55 = vpop.f32.mrf.mxu0 }
 0x566   : > { %v1198_v56 = vpop.f32.mrf.mxu0 }
 0x56e   : > { %v1327_v57 = vpop.f32.mrf.mxu0 }
 0x56f   : > { %v2218_v58 = vpack.i.bf16 %v1327_v57, %v1084_v53 }
 0x571   : > { %2219 = vrot.lane.b32.xlu2 %v2218_v58, %s2559_s22 }
 0x576   : > { %v1329_v59 = vpop.f32.mrf.mxu0 }
 0x57e   : > { %v1439_v60 = vpop.f32.mrf.mxu0 }
 0x57f   : > { %v2228_v61 = vpack.i.bf16 %v1439_v60, %v1196_v55 }
 0x581   : > { %2229 = vrot.lane.b32.xlu1 %v2228_v61, %s2560_s12 }
 0x586   : > { %v1441_v62 = vpop.f32.mrf.mxu0 }
 0x59d   : > { %v1383_v63 = vpop.f32.mrf.mxu2 }
 0x59e   : > { %v2223_v0 = vpack.i.bf16 %v1383_v63, %v1140_v41 }
 0x5a0   : > { %2224 = vrot.lane.b32.xlu0 %v2223_v0, %s2561_s25 }
 0x5a5   : > { %v1385_v1 = vpop.f32.mrf.mxu2 }
 0x5cb   : > { %v2220_v6 = vpop.permute.xlu2 %2219 }
 0x5cc   : > { %v2222_v7 = vunpack.i.h.bf16 %v2220_v6  ;;  %v2221_v8 = vunpack.i.l.bf16 %v2220_v6 }
 0x5ce   : > { %v1212_v35 = vsel %vm977_vm2, %v2967_v12, %v2221_v8  ;;  %v1455_v14 = vsel %vm977_vm2, %v1268_v51, %v2222_v7  ;;  %v2237_v8 = vld [vmem:[%s719_s9] ss:$0 sm:$0xff] }
 0x5f3   : > { %v2230_v9 = vpop.permute.xlu1 %2229 }
 0x5f4   : > { %v2232_v15 = vunpack.i.h.bf16 %v2230_v9  ;;  %v2231_v16 = vunpack.i.l.bf16 %v2230_v9 }
 0x612   : > { %v2225_v10 = vpop.permute.xlu0 %2224 }
 0x613   : > { %v2227_v11 = vunpack.i.h.bf16 %v2225_v10  ;;  %v2226_v13 = vunpack.i.l.bf16 %v2225_v10 }
 0x615   : > { %v1456_v49 = vsel %vm1213_vm4, %v1455_v14, %v2227_v11  ;;  %v1214_v17 = vsel %vm1213_vm4, %v1212_v35, %v2226_v13 }
 0x616   : > { %v1457_v18 = vsel %vm1215_vm5, %v1456_v49, %v2232_v15  ;;  %v1216_v19 = vsel %vm1215_vm5, %v1214_v17, %v2231_v16  ;;  %v2119_v15 = vld [vmem:[%s2881_s6 + $0x18] sm:$0xff]  ;;  %v2118_v16 = vld [vmem:[%s2881_s6 + $0x10] sm:$0xff]  ;;  %v2117_v49 = vld [vmem:[%s2881_s6 + $0x8] sm:$0xff] }
 0x617   : > { %v1458_v20 = vpack.c.bf16 %v1457_v18, %v1216_v19  ;;  %1646 = vmatpush.bf16.msrb.mxu3 %v2119_v15  ;;  %v2116_v17 = vld [vmem:[%s2881_s6] sm:$0xff] }
 0x618   : > { %v2238_v19 = vld [vmem:[%s863_s1] ss:$0 sm:$0xff] }
 0x619   : > { %2071 = vmatmul.msk.bf16.vlgmr.msra.gmra.mxu1 %vm913_vm1, %v1458_v20 }
 0x61b   : > { %1647 = vmatpush.bf16.msrb.mxu3 %v2118_v16 }
 0x61f   : > { %1648 = vmatpush.bf16.msrb.mxu3 %v2117_v49 }
 0x623   : > { %1649 = vmatpush.bf16.msrb.mxu3 %v2116_v17 }
 0x696   : > { %v1491_v23 = vpop.f32.mrf.mxu1 }
 0x697   : > { %v1492_v24 = vadd.f32 %v2235_v22, %v1491_v23 }
 0x699   : > { %v1496_v12 = vadd.f32 %v1492_v24, %v2893_v3  ;;  %v3032_v3 = vsel %vm1511_vm6, %v2275_v30, %v1510_v34 }
 0x69b   : > { %v1500_v25 = vsel %vm913_vm1, %v1496_v12, 0.0 }
 0x69c   : > { %1501 = vadd.xlane.f32.xlu0 %v1500_v25 }
 0x69e   : > { %v1493_v21 = vpop.f32.mrf.mxu1 }
 0x69f   : > { %v1494_v26 = vadd.f32 %v2235_v22, %v1493_v21  ;;  %v2239_v21 = vld [vmem:[%s871_s4] ss:$0 sm:$0xff] }
 0x6a1   : > { %v1497_v27 = vadd.f32 %v1494_v26, %v2895_v4 }
 0x6a3   : > { %v1503_v28 = vsel %vm913_vm1, %v1497_v27, 0.0 }
 0x6a4   : > { %1504 = vadd.xlane.f32.xlu1 %v1503_v28 }
 0x70f   : > { %v1502_v36 = vpop.xlane.xlu0 %1501 }
 0x710   : > { %v1513_v37 = vmul.f32 %v3032_v3, %v1502_v36 }
 0x712   : > { %v1515_v38 = vsub.f32 %v1496_v12, %v1513_v37 }
 0x714   : > { %v1517_v4 = vmul.f32 %v1515_v38, %v1515_v38 }
 0x716   : > { %v1519_v39 = vsel %vm913_vm1, %v1517_v4, 0.0 }
 0x717   : > { %v1505_v40 = vpop.xlane.xlu1 %1504  ;;  %1520 = vadd.xlane.f32.xlu2 %v1519_v39 }
 0x718   : > { %v1514_v41 = vmul.f32 %v3032_v3, %v1505_v40 }
 0x71a   : > { %v1516_v42 = vsub.f32 %v1497_v27, %v1514_v41 }
 0x71c   : > { %v1518_v43 = vmul.f32 %v1516_v42, %v1516_v42 }
 0x71e   : > { %v1522_v44 = vsel %vm913_vm1, %v1518_v43, 0.0 }
 0x71f   : > { %1523 = vadd.xlane.f32.xlu0 %v1522_v44 }
 0x78a   : > { %v1521_v46 = vpop.xlane.xlu2 %1520 }
 0x78b   : > { %v1525_v47 = vmul.f32 %v1521_v46, %v3032_v3 }
 0x78d   : > { %v1527_v50 = vadd.f32 1e-05, %v1525_v47 }
 0x78f   : > { %2276 = vrsqrt.f32 %v1527_v50  ;;  %vm1535_vm8 = vweird.f32 %v1527_v50 }
 0x792   : > { %v1524_v51 = vpop.xlane.xlu0 %1523 }
 0x793   : > { %v1526_v52 = vmul.f32 %v1524_v51, %v3032_v3 }
 0x795   : > { %v2277_v53 = vpop.eup %2276  ;;  %v1528_v54 = vadd.f32 1e-05, %v1526_v52 }
 0x796   : > { %v1530_v55 = vmul.f32 %v2277_v53, %v1527_v50  ;;  %vm1536_vm7 = vweird.f32 %v2277_v53 }
 0x797   : > { %2278 = vrsqrt.f32 %v1528_v54  ;;  %vm1537_vm9 = vmor %vm1535_vm8, %vm1536_vm7  ;;  %vm1545_vm11 = vweird.f32 %v1528_v54 }
 0x798   : > { %v1531_v56 = vmul.f32 %v2277_v53, %v1530_v55 }
 0x79a   : > { %v1532_v57 = vmul.f32 0.5, %v1531_v56 }
 0x79c   : > { %v1533_v58 = vsub.f32 1.5, %v1532_v57 }
 0x79d   : > { %v2279_v59 = vpop.eup %2278 }
 0x79e   : > { %v1534_v60 = vmul.f32 %v2277_v53, %v1533_v58  ;;  %v1540_v61 = vmul.f32 %v2279_v59, %v1528_v54  ;;  %vm1546_vm10 = vweird.f32 %v2279_v59 }
 0x79f   : > { %vm1547_vm12 = vmor %vm1545_vm11, %vm1546_vm10 }
 0x7a0   : > { %v1541_v62 = vmul.f32 %v2279_v59, %v1540_v61  ;;  %v1538_v63 = vsel %vm1537_vm9, %v2277_v53, %v1534_v60 }
 0x7a1   : > { %v1549_v5 = vmul.f32 %v1538_v63, %v1515_v38 }
 0x7a2   : > { %v1542_v0 = vmul.f32 0.5, %v1541_v62  ;;  %v2241_v62 = vld [vmem:[%s738_s19] ss:$0 sm:$0xff] }
 0x7a3   : > { %v1554_v9 = vmul.f32 %v2236_v2, %v1549_v5 }
 0x7a4   : > { %v1543_v1 = vsub.f32 1.5, %v1542_v0 }
 0x7a5   : > { %v1559_v13 = vadd.f32 %v2237_v8, %v1554_v9 }
 0x7a6   : > { %v1544_v6 = vmul.f32 %v2279_v59, %v1543_v1 }
 0x7a8   : > { %v1548_v7 = vsel %vm1547_vm12, %v2279_v59, %v1544_v6  ;;  %v2240_v59 = vld [vmem:[%s874_s15] ss:$0 sm:$0xff] }
 0x7a9   : > { %v1550_v10 = vmul.f32 %v1548_v7, %v1516_v42 }
 0x7ab   : > { %v1555_v11 = vmul.f32 %v2236_v2, %v1550_v10 }
 0x7ad   : > { %v1560_v35 = vadd.f32 %v2237_v8, %v1555_v11 }
 0x7af   : > { %v1561_v14 = vpack.c.bf16 %v1560_v35, %v1559_v13 }
 0x7b1   : > { %2080 = vmatmul.msk.bf16.vlgmr.msra.gmra.mxu2 %vm913_vm1, %v1561_v14 }
 0x834   : > { %v1594_v18 = vpop.f32.mrf.mxu2 }
 0x835   : > { %v1595_v20 = vadd.f32 %v2238_v19, %v1594_v18 }
 0x837   : > { %v1599_v24 = vmax.f32 %v1595_v20, 0.0 }
 0x83c   : > { %v1596_v22 = vpop.f32.mrf.mxu2 }
 0x83d   : > { %v1597_v23 = vadd.f32 %v2238_v19, %v1596_v22 }
 0x83f   : > { %v1600_v12 = vmax.f32 %v1597_v23, 0.0 }
 0x841   : > { %v1601_v25 = vpack.c.bf16 %v1600_v12, %v1599_v24 }
 0x843   : > { %2097 = vmatmul.msk.bf16.vlgmr.msrb.gmra.mxu3 %vm1638_vm13, %v1601_v25 }
 0x8c6   : > { %v1651_v26 = vpop.f32.mrf.mxu3 }
 0x8c7   : > { %v1652_v27 = vadd.f32 %v2239_v21, %v1651_v26 }
 0x8c9   : > { %v1656_v28 = vadd.f32 %v1652_v27, %v1559_v13 }
 0x8cb   : > { %v1660_v29 = vsel %vm913_vm1, %v1656_v28, 0.0 }
 0x8cc   : > { %1661 = vadd.xlane.f32.xlu1 %v1660_v29 }
 0x8ce   : > { %v1653_v30 = vpop.f32.mrf.mxu3 }
 0x8cf   : > { %v1654_v31 = vadd.f32 %v2239_v21, %v1653_v30 }
 0x8d1   : > { %v1657_v32 = vadd.f32 %v1654_v31, %v1560_v35 }
 0x8d3   : > { %v1663_v33 = vsel %vm913_vm1, %v1657_v32, 0.0 }
 0x8d4   : > { %1664 = vadd.xlane.f32.xlu2 %v1663_v33 }
 0x93f   : > { %v1662_v34 = vpop.xlane.xlu1 %1661 }
 0x940   : > { %v1666_v36 = vmul.f32 %v1662_v34, %v3032_v3 }
 0x942   : > { %v1668_v37 = vsub.f32 %v1656_v28, %v1666_v36 }
 0x944   : > { %v1670_v38 = vmul.f32 %v1668_v37, %v1668_v37 }
 0x946   : > { %v1672_v4 = vsel %vm913_vm1, %v1670_v38, 0.0 }
 0x947   : > { %v1665_v39 = vpop.xlane.xlu2 %1664  ;;  %1673 = vadd.xlane.f32.xlu0 %v1672_v4 }
 0x948   : > { %v1667_v40 = vmul.f32 %v1665_v39, %v3032_v3 }
 0x94a   : > { %v1669_v41 = vsub.f32 %v1657_v32, %v1667_v40 }
 0x94c   : > { %v1671_v42 = vmul.f32 %v1669_v41, %v1669_v41 }
 0x94e   : > { %v1675_v43 = vsel %vm913_vm1, %v1671_v42, 0.0 }
 0x94f   : > { %1676 = vadd.xlane.f32.xlu1 %v1675_v43 }
 0x9ba   : > { %v1674_v44 = vpop.xlane.xlu0 %1673 }
 0x9bb   : > { %v1678_v45 = vmul.f32 %v1674_v44, %v3032_v3 }
 0x9bd   : > { %v1680_v46 = vadd.f32 1e-05, %v1678_v45 }
 0x9bf   : > { %2280 = vrsqrt.f32 %v1680_v46  ;;  %vm1688_vm15 = vweird.f32 %v1680_v46 }
 0x9c2   : > { %v1677_v47 = vpop.xlane.xlu1 %1676 }
 0x9c3   : > { %v1679_v48 = vmul.f32 %v1677_v47, %v3032_v3 }
 0x9c5   : > { %v2281_v50 = vpop.eup %2280  ;;  %v1681_v51 = vadd.f32 1e-05, %v1679_v48 }
 0x9c6   : > { %v1683_v52 = vmul.f32 %v2281_v50, %v1680_v46  ;;  %vm1689_vm14 = vweird.f32 %v2281_v50 }
 0x9c7   : > { %2282 = vrsqrt.f32 %v1681_v51  ;;  %vm1690_vm0 = vmor %vm1688_vm15, %vm1689_vm14  ;;  %vm1698_vm3 = vweird.f32 %v1681_v51 }
 0x9c8   : > { %v1684_v53 = vmul.f32 %v2281_v50, %v1683_v52 }
 0x9ca   : > { %v1685_v54 = vmul.f32 0.5, %v1684_v53 }
 0x9cc   : > { %v1686_v55 = vsub.f32 1.5, %v1685_v54 }
 0x9cd   : > { %v2283_v56 = vpop.eup %2282 }
 0x9ce   : > { %v1687_v57 = vmul.f32 %v2281_v50, %v1686_v55  ;;  %v1693_v58 = vmul.f32 %v2283_v56, %v1681_v51  ;;  %vm1699_vm2 = vweird.f32 %v2283_v56 }
 0x9cf   : > { %vm1700_vm4 = vmor %vm1698_vm3, %vm1699_vm2 }
 0x9d0   : > { %v1691_v60 = vsel %vm1690_vm0, %v2281_v50, %v1687_v57  ;;  %v1694_v61 = vmul.f32 %v2283_v56, %v1693_v58 }
 0x9d1   : > { %v1702_v63 = vmul.f32 %v1691_v60, %v1668_v37 }
 0x9d2   : > { %v1695_v0 = vmul.f32 0.5, %v1694_v61 }
 0x9d3   : > { %v1707_v1 = vmul.f32 %v2240_v59, %v1702_v63 }
 0x9d4   : > { %v1696_v2 = vsub.f32 1.5, %v1695_v0 }
 0x9d5   : > { %v1712_v5 = vadd.f32 %v2241_v62, %v1707_v1 }
 0x9d6   : > { %v1697_v6 = vmul.f32 %v2283_v56, %v1696_v2 }
 0x9d7   : > { %1714 = vst.msk [vmem:[#allocation2] sm:$0xff] %vm913_vm1, %v1712_v5 }
 0x9d8   : > { %v1701_v7 = vsel %vm1700_vm4, %v2283_v56, %v1697_v6 }
 0x9d9   : > { %v1703_v8 = vmul.f32 %v1701_v7, %v1669_v41 }
 0x9db   : > { %v1708_v9 = vmul.f32 %v2240_v59, %v1703_v8  ;;  %1719 = sbr.rel (%p2098_p6) target bundleno = 2805 (0xaf5), region = 124 }
 0x9dd   : > { %v1713_v10 = vadd.f32 %v2241_v62, %v1708_v9 }
 0x9df   : > { %1715 = vst.msk [vmem:[#allocation2 + $0x8] sm:$0xff] %vm913_vm1, %v1713_v10 }
 0x9e0   : > { %v1722_v11 = vsel %vm913_vm1, %v1712_v5, 0.0  ;;  %v1725_v13 = vsel %vm913_vm1, %v1713_v10, 0.0  ;;  %v2284_v36 = vld [vmem:[%s3186_s20] ss:$0 sm:$0xff] }
 0x9e1   : > { %1723 = vadd.xlane.f32.xlu0 %v1722_v11  ;;  %v2285_v4 = vld [vmem:[%s3187_s27] ss:$0 sm:$0xff] }
 0x9e9   : > { %1726 = vadd.xlane.f32.xlu0 %v1725_v13 }
 0xa54   : > { %v1724_v35 = vpop.xlane.xlu0 %1723 }
 0xa55   : > { %v1728_v14 = vmul.f32 %v1724_v35, %v3032_v3 }
 0xa57   : > { %v1730_v15 = vsub.f32 %v1712_v5, %v1728_v14 }
 0xa59   : > { %v1732_v16 = vmul.f32 %v1730_v15, %v1730_v15 }
 0xa5b   : > { %v1734_v49 = vsel %vm913_vm1, %v1732_v16, 0.0 }
 0xa5c   : > { %1735 = vadd.xlane.f32.xlu1 %v1734_v49  ;;  %v1727_v17 = vpop.xlane.xlu0 %1726 }
 0xa5d   : > { %v1729_v18 = vmul.f32 %v1727_v17, %v3032_v3 }
 0xa5f   : > { %v1731_v19 = vsub.f32 %v1713_v10, %v1729_v18 }
 0xa61   : > { %v1733_v20 = vmul.f32 %v1731_v19, %v1731_v19 }
 0xa63   : > { %v1737_v22 = vsel %vm913_vm1, %v1733_v20, 0.0 }
 0xa64   : > { %1738 = vadd.xlane.f32.xlu1 %v1737_v22 }
 0xacf   : > { %v1736_v23 = vpop.xlane.xlu1 %1735 }
 0xad0   : > { %v1740_v24 = vmul.f32 %v1736_v23, %v3032_v3 }
 0xad2   : > { %v1742_v12 = vadd.f32 1e-05, %v1740_v24 }
 0xad4   : > { %2286 = vrsqrt.f32 %v1742_v12  ;;  %vm1750_vm6 = vweird.f32 %v1742_v12 }
 0xad7   : > { %v1739_v25 = vpop.xlane.xlu1 %1738 }
 0xad8   : > { %v1741_v21 = vmul.f32 %v1739_v25, %v3032_v3 }
 0xada   : > { %v2287_v26 = vpop.eup %2286  ;;  %v1743_v27 = vadd.f32 1e-05, %v1741_v21 }
 0xadb   : > { %v1745_v28 = vmul.f32 %v2287_v26, %v1742_v12  ;;  %vm1751_vm5 = vweird.f32 %v2287_v26 }
 0xadc   : > { %2288 = vrsqrt.f32 %v1743_v27  ;;  %vm1752_vm7 = vmor %vm1750_vm6, %vm1751_vm5  ;;  %vm1760_vm9 = vweird.f32 %v1743_v27 }
 0xadd   : > { %v1746_v29 = vmul.f32 %v2287_v26, %v1745_v28 }
 0xadf   : > { %v1747_v30 = vmul.f32 0.5, %v1746_v29 }
 0xae1   : > { %v1748_v31 = vsub.f32 1.5, %v1747_v30 }
 0xae2   : > { %v2289_v32 = vpop.eup %2288 }
 0xae3   : > { %v1749_v33 = vmul.f32 %v2287_v26, %v1748_v31  ;;  %v1755_v34 = vmul.f32 %v2289_v32, %v1743_v27  ;;  %vm1761_vm8 = vweird.f32 %v2289_v32 }
 0xae4   : > { %vm1762_vm10 = vmor %vm1760_vm9, %vm1761_vm8 }
 0xae5   : > { %v1753_v37 = vsel %vm1752_vm7, %v2287_v26, %v1749_v33  ;;  %v1756_v38 = vmul.f32 %v2289_v32, %v1755_v34 }
 0xae6   : > { %v1764_v3 = vmul.f32 %v1753_v37, %v1730_v15 }
 0xae7   : > { %v1757_v39 = vmul.f32 0.5, %v1756_v38 }
 0xae8   : > { %v1769_v40 = vmul.f32 %v2284_v36, %v1764_v3 }
 0xae9   : > { %v1758_v41 = vsub.f32 1.5, %v1757_v39 }
 0xaea   : > { %v1774_v42 = vadd.f32 %v2285_v4, %v1769_v40 }
 0xaeb   : > { %v1759_v43 = vmul.f32 %v2289_v32, %v1758_v41 }
 0xaec   : > { %1776 = vst.msk [vmem:[#allocation12] sm:$0xff] %vm913_vm1, %v1774_v42 }
 0xaed   : > { %v1763_v44 = vsel %vm1762_vm10, %v2289_v32, %v1759_v43 }
 0xaee   : > { %v1765_v45 = vmul.f32 %v1763_v44, %v1731_v19 }
 0xaf0   : > { %v1770_v46 = vmul.f32 %v2284_v36, %v1765_v45 }
 0xaf2   : > { %v1775_v47 = vadd.f32 %v2285_v4, %v1770_v46 }
 0xaf4   : > { %1777 = vst.msk [vmem:[#allocation12 + $0x8] sm:$0xff] %vm913_vm1, %v1775_v47 }
 0xaf5 PF: > { %p2165_p0 = scmp.eq.s32.totalorder %s2679_s0, 1  ;;  %s2563_s13 = smov [#allocation12]  }
 0xaf6   : > { %s1783_s18 = sshll.u32 %s2563_s13, 4  ;;  %s3188_s29 = sld [smem:[#allocation35_spill]]  ;;  %s1784_s18 = int_to_ptr.vmem [resolvable:$true] %s1783_s18 }
 0xaf7   : > { %s2564_s24 = smov 128  }
 0xafc   : > { %s1785_s11 = sshll.u32 %s3188_s29, 4  ;;  %s1786_s11 = int_to_ptr.hbm [resolvable:$true] %s1785_s11 }
 0xafd   : > { %2137 = dma.vmem_to_hbm [thread:$0]  (%p2165_p0), %s1784_s18, 256, %s1786_s11, [#allocation5], %s2564_s24, %s2564_s24, %s2559_s22  }
 0xafe   : > { %2527 = dma.done.wait (%p2165_p0), [#allocation5], 256  }
 0xaff   : > { %2529 = vsyncadd (%p2165_p0), [#allocation5], 4294967040 }
 0xb00 PF: > { %s3189_s30 = sld [smem:[#allocation18_spill]]  ;;  %s3192_s27 = smov %s2536_s28 }
 0xb01   : > { %s3190_s17 = sld [smem:[#allocation17_spill]] }
 0xb02   : > { %s3191_s29 = sld [smem:[#allocation19_spill]] }
 0xb06   : > { %p28_p3 = scmp.ge.s32.totalorder %s3189_s30, 4  }
 0xb07   : > { %s3193_s28 = smov %s3190_s17 }
 0xb08   :  { %30 = sbr.rel (!%p28_p3) target bundleno = 21 (0x15), region = 207 }
 0xb0d   :  { %1802 = vsyncpa [#allocation4], 1 }
 0xb0e   :  { %1804 = vsyncpa [#allocation4 + $0x1], 1 }
 0xb0f   :  { %1805 = vsyncpa [#allocation7], 1 }
 0xb10   :  { %1806 = vsyncpa [#allocation5], 1 }
 0xb11   :  { %1808 = vsyncpa [#allocation5 + $0x1], 1 }

</bundles_post_ra>
